<compile_context>
chip_gen: v6e
topology: v6e:2x2x1
jax: 0.10.0
libtpu: 0.0.40
codegen_flags: <defaults>
</compile_context>

<pallas_src>
import functools

import jax
import jax.numpy as jnp
from jax.experimental import pallas as pl
from jax.experimental.pallas import tpu as pltpu

BN_EPS = 1e-5
LANE = 128


def _round_up(x, m):
    return (x + m - 1) // m * m


def _largest_aligned_divisor(n, target, align=8):
    """Largest divisor of n that is <= target and a multiple of `align`.

    Falls back to n itself (block == full dim is always legal)."""
    for t in range(min(target, n), align - 1, -1):
        if n % t == 0 and t % align == 0:
            return t
    return n


def _pick_h_tile(h, wp, cout_p, budget_bytes=8 * 1024 * 1024):
    """Largest divisor of h whose double-buffered bf16 conv block fits budget."""
    per_row = wp * cout_p * 2 * 2            # bf16 input block, double-buffered
    t = max(1, min(h, budget_bytes // max(per_row, 1)))
    while h % t:
        t -= 1
    return t


def _vmem_limit_bytes():
    """Per-generation scoped-VMEM budget (3/4 of physical, capped at 96 MiB)."""
    try:
        cap = int(pltpu.get_tpu_info().vmem_capacity_bytes)
        return max(min(cap * 3 // 4, 96 * 1024 * 1024), 32 * 1024 * 1024)
    except Exception:  # pragma: no cover - conservative fallback (fits v7x too)
        return 48 * 1024 * 1024


# ---------------------------------------------------------------------------
# Phase 1: conv (folded-tap or per-tap MXU matmuls) + per-image BN partials
# ---------------------------------------------------------------------------
def _conv_stats_kernel(x_ref, w_ref, mask_ref, conv_ref, sum_ref, sq_ref,
                       fold_ref, *, K, Wp, tile_s, cin_p, fold_taps):
    # x_ref:    (1, Sp2, Cin_p)        f32   padded+flattened image (+guard rows)
    # w_ref:    (K*K*Cin_p, Cout_p)    bf16  per-tap weights stacked along rows
    # mask_ref: (tile_s, 1)            f32   1.0 on valid output columns
    # conv_ref: (1, tile_s, Cout_p)    bf16  conv activations for this tile
    # sum_ref:  (1, 1, Cout_p)         f32   per-image channel sum (accum over t)
    # sq_ref:   (1, 1, Cout_p)         f32   per-image channel sum of squares
    # fold_ref: (tile_s, K*K*Cin_p)    bf16  im2col scratch (fold path only)
    t = pl.program_id(1)

    @pl.when(t == 0)
    def _init():
        sum_ref[...] = jnp.zeros_like(sum_ref)
        sq_ref[...] = jnp.zeros_like(sq_ref)

    row0 = t * tile_s
    if tile_s % 8 == 0:
        row0 = pl.multiple_of(row0, 8)

    if fold_taps:
        # Fold the K*K taps into the contraction dim: build the im2col tile in
        # VMEM (columns ordered (tap, cin) to match w_ref rows), one MXU dot.
        for kh in range(K):
            for kw in range(K):
                kk = kh * K + kw
                fold_ref[:, kk * cin_p:(kk + 1) * cin_p] = x_ref[
                    0, pl.ds(row0 + kh * Wp + kw, tile_s), :
                ].astype(fold_ref.dtype)
        acc = jnp.dot(fold_ref[...], w_ref[...],
                      preferred_element_type=jnp.float32)
    else:
        # Deep-contraction layers: K*K accumulated dots, acc stays a value.
        acc = jnp.zeros((tile_s, w_ref.shape[-1]), jnp.float32)
        for kh in range(K):
            for kw in range(K):
                kk = kh * K + kw
                lhs = x_ref[0, pl.ds(row0 + kh * Wp + kw, tile_s), :].astype(
                    w_ref.dtype)
                acc = acc + jnp.dot(lhs, w_ref[kk * cin_p:(kk + 1) * cin_p, :],
                                    preferred_element_type=jnp.float32)

    # bf16 slab store (stats are taken from the f32 acc below, while hot).
    conv_ref[0] = acc.astype(conv_ref.dtype)

    masked = acc * mask_ref[...]                      # zero the pad columns
    sum_ref[0] += jnp.sum(masked, axis=0, keepdims=True)
    sq_ref[0] += jnp.sum(masked * masked, axis=0, keepdims=True)


# ---------------------------------------------------------------------------
# Phase 2: y = relu(conv * scale + shift); strip pad cols + pad channels
# ---------------------------------------------------------------------------
def _bn_relu_kernel(conv_ref, scale_ref, shift_ref, o_ref, *, pad, W, Cout):
    # conv_ref: (1, TILE_H, Wp, Cout_p) bf16; o_ref: (1, TILE_H, W, Cout) f32
    x = conv_ref[:, :, pad:pad + W, :Cout].astype(jnp.float32)
    y = x * scale_ref[:, :Cout] + shift_ref[:, :Cout]
    o_ref[...] = jnp.maximum(y, 0.0)


@functools.partial(
    jax.jit,
    static_argnames=("kernel_size", "padding", "compute_dtype", "tile_s",
                     "fold_taps"))
def conv_block(x, weight, gamma, beta, *, kernel_size=3, padding=1,
               compute_dtype=jnp.bfloat16, tile_s=512, fold_taps=None):
    """Conv2d(K, pad=K//2, bias=False) -> BatchNorm2d(batch stats) -> ReLU.

    x: (N, Cin, H, W) f32; weight: (Cout, Cin, K, K); gamma/beta: (Cout,).
    Returns (N, Cout, H, W) f32.
    """
    N, Cin, H, W = x.shape
    Cout = weight.shape[0]
    K = kernel_size
    assert K % 2 == 1 and padding == K // 2, "only 'same' odd-kernel convs supported"
    pad = padding

    Hp, Wp = H + 2 * pad, W + 2 * pad
    HWp = H * Wp                           # conv-slab rows per image (incl. pad cols)
    KK = K * K
    Cin_p = _round_up(Cin, 16)             # contraction chunk (bf16 sublane aligned)
    Cout_p = _round_up(Cout, LANE)         # lane-dense output channels
    if fold_taps is None:
        fold_taps = Cin_p <= 64            # fold only where per-tap depth is shallow

    TILE_S = _largest_aligned_divisor(HWp, tile_s, 8)
    S_tiles = HWp // TILE_S
    vmem_limit = _vmem_limit_bytes()

    # ---- host-side layout prep (cheap, fused under jit) ----
    xh = jnp.transpose(x, (0, 2, 3, 1)).astype(jnp.float32)           # NHWC
    xh = jnp.pad(xh, ((0, 0), (pad, pad), (pad, pad), (0, Cin_p - Cin)))
    xf = xh.reshape(N, Hp * Wp, Cin_p)
    xf = jnp.pad(xf, ((0, 0), (pad, pad), (0, 0)))                    # guard rows
    Sp2 = Hp * Wp + 2 * pad

    wq = jnp.transpose(weight, (2, 3, 1, 0)).astype(jnp.float32)      # (K,K,Cin,Cout)
    wq = jnp.pad(wq, ((0, 0), (0, 0), (0, Cin_p - Cin), (0, Cout_p - Cout)))
    w_mat = wq.reshape(KK * Cin_p, Cout_p).astype(compute_dtype)

    col = jnp.arange(HWp, dtype=jnp.int32) % Wp
    vmask = ((col >= pad) & (col < pad + W)).astype(jnp.float32).reshape(HWp, 1)

    # ---- phase 1: conv + per-image stats; batch axis parallel, spatial arbitrary ----
    kernel1 = functools.partial(_conv_stats_kernel, K=K, Wp=Wp, tile_s=TILE_S,
                                cin_p=Cin_p, fold_taps=fold_taps)
    fold_scratch = (pltpu.VMEM((TILE_S, KK * Cin_p), compute_dtype)
                    if fold_taps else pltpu.VMEM((8, LANE), compute_dtype))

    conv_slab, ch_sum, ch_sq = pl.pallas_call(
        kernel1,
        out_shape=(
            jax.ShapeDtypeStruct((N, HWp, Cout_p), compute_dtype),   # bf16 slab
            jax.ShapeDtypeStruct((N, 1, Cout_p), jnp.float32),
            jax.ShapeDtypeStruct((N, 1, Cout_p), jnp.float32),
        ),
        grid=(N, S_tiles),
        in_specs=[
            # whole padded image stays resident across its spatial tiles
            pl.BlockSpec((1, Sp2, Cin_p), lambda n, t: (n, 0, 0)),
            # TODO(synk): pipeline_mode=pl.Buffered(1) (constant-index weights)
            pl.BlockSpec((KK * Cin_p, Cout_p), lambda n, t: (0, 0)),
            pl.BlockSpec((TILE_S, 1), lambda n, t: (t, 0)),
        ],
        out_specs=(
            pl.BlockSpec((1, TILE_S, Cout_p), lambda n, t: (n, t, 0)),
            pl.BlockSpec((1, 1, Cout_p), lambda n, t: (n, 0, 0)),
            pl.BlockSpec((1, 1, Cout_p), lambda n, t: (n, 0, 0)),
        ),
        scratch_shapes=[fold_scratch],
        compiler_params=pltpu.CompilerParams(
            dimension_semantics=("parallel", "arbitrary"),
            vmem_limit_bytes=vmem_limit,
        ),
    )(xf, w_mat, vmask)

    # ---- BN finalize (tiny per-channel math in XLA between the two kernels) ----
    count = jnp.float32(N * H * W)
    tot_sum = jnp.sum(ch_sum[:, 0, :], axis=0)
    tot_sq = jnp.sum(ch_sq[:, 0, :], axis=0)
    mean = tot_sum / count
    var = jnp.maximum(tot_sq / count - mean * mean, 0.0)
    inv_std = jax.lax.rsqrt(var + BN_EPS)
    gamma_p = jnp.pad(gamma.astype(jnp.float32), (0, Cout_p - Cout))
    beta_p = jnp.pad(beta.astype(jnp.float32), (0, Cout_p - Cout))
    scale = (gamma_p * inv_std).reshape(1, Cout_p)
    shift = (beta_p - mean * gamma_p * inv_std).reshape(1, Cout_p)

    # ---- phase 2: relu(conv*scale+shift), strip pads in-kernel, NHWC out ----
    conv4d = conv_slab.reshape(N, H, Wp, Cout_p)
    TILE_H = _pick_h_tile(H, Wp, Cout_p)
    out_nhwc = pl.pallas_call(
        functools.partial(_bn_relu_kernel, pad=pad, W=W, Cout=Cout),
        out_shape=jax.ShapeDtypeStruct((N, H, W, Cout), jnp.float32),
        grid=(N, H // TILE_H),
        in_specs=[
            pl.BlockSpec((1, TILE_H, Wp, Cout_p), lambda n, h: (n, h, 0, 0)),
            pl.BlockSpec((1, Cout_p), lambda n, h: (0, 0)),
            pl.BlockSpec((1, Cout_p), lambda n, h: (0, 0)),
        ],
        out_specs=pl.BlockSpec((1, TILE_H, W, Cout), lambda n, h: (n, h, 0, 0)),
        compiler_params=pltpu.CompilerParams(
            dimension_semantics=("parallel", "parallel"),
            vmem_limit_bytes=vmem_limit,
        ),
    )(conv4d, scale, shift)

    # NCHW to match the PyTorch module contract (NHWC consumers could skip this).
    return jnp.transpose(out_nhwc, (0, 3, 1, 2))


def _reference(x, weight, gamma, beta, compute_dtype=jnp.bfloat16):
    # Pure-JAX/XLA reference (inputs rounded to the same MXU dtype).
    xr = x.astype(compute_dtype).astype(jnp.float32)
    wr = weight.astype(compute_dtype).astype(jnp.float32)
    y = jax.lax.conv_general_dilated(
        xr, wr, window_strides=(1, 1), padding=((1, 1), (1, 1)),
        dimension_numbers=("NCHW", "OIHW", "NCHW"))
    mean = jnp.mean(y, axis=(0, 2, 3), keepdims=True)
    var = jnp.mean((y - mean) ** 2, axis=(0, 2, 3), keepdims=True)
    yhat = (y - mean) * jax.lax.rsqrt(var + BN_EPS)
    yhat = yhat * gamma.reshape(1, -1, 1, 1) + beta.reshape(1, -1, 1, 1)
    return jnp.maximum(yhat, 0.0)


if __name__ == "__main__":
    key = jax.random.PRNGKey(0)
    k_x, k_w, k_g, k_b = jax.random.split(key, 4)

    N, Cin, H, W = 2, 4, 16, 16
    Cout, K = 8, 3

    x = jax.random.normal(k_x, (N, Cin, H, W), dtype=jnp.float32)
    weight = jax.random.normal(k_w, (Cout, Cin, K, K), dtype=jnp.float32) * 0.1
    gamma = 1.0 + 0.1 * jax.random.normal(k_g, (Cout,), dtype=jnp.float32)
    beta = 0.1 * jax.random.normal(k_b, (Cout,), dtype=jnp.float32)

    ref = jax.block_until_ready(_reference(x, weight, gamma, beta))

    # Folded-tap path; tile_s=96 exercises multi-spatial-tile stats accumulation.
    out = jax.block_until_ready(conv_block(x, weight, gamma, beta, tile_s=96))
    assert out.shape == (N, Cout, H, W), out.shape
    max_err = float(jnp.max(jnp.abs(out - ref)))
    assert max_err < 3e-2, f"fold path max abs err {max_err}"

    # Per-tap accumulation path (used for deep-Cin layers), single spatial tile.
    out2 = jax.block_until_ready(conv_block(x, weight, gamma, beta,
                                            fold_taps=False))
    max_err2 = float(jnp.max(jnp.abs(out2 - ref)))
    assert max_err2 < 3e-2, f"per-tap path max abs err {max_err2}"

    print("KERNEL_OK")
</pallas_src>

<mosaic_0001>
module attributes {stable_mosaic.version = 11 : i64} {
  func.func @_bn_relu_kernel(%arg0: i32, %arg1: i32, %arg2: memref<1x16x18x128xbf16, #tpu.memory_space<vmem>>, %arg3: memref<1x128xf32, #tpu.memory_space<vmem>>, %arg4: memref<1x128xf32, #tpu.memory_space<vmem>>, %arg5: memref<1x16x16x8xf32, #tpu.memory_space<vmem>>) attributes {dimension_semantics = [#tpu.dimension_semantics<parallel>, #tpu.dimension_semantics<parallel>], iteration_bounds = array<i64: 2, 1>, scalar_prefetch = 0 : i64, scratch_operands = 0 : i64, tpu.core_type = #tpu.core_type<tc>, window_params = [{transform_indices = @transform_0, window_bounds = array<i64: 1, 16, 18, 128>}, {pipeline_mode = #tpu.pipeline_mode<synchronous>, transform_indices = @transform_1, window_bounds = array<i64: 1, 128>}, {pipeline_mode = #tpu.pipeline_mode<synchronous>, transform_indices = @transform_2, window_bounds = array<i64: 1, 128>}, {transform_indices = @transform_3, window_bounds = array<i64: 1, 16, 16, 8>}]} {
    %c0 = arith.constant 0 : index
    %c0_0 = arith.constant 0 : index
    %c1 = arith.constant 1 : index
    %c0_1 = arith.constant 0 : index
    %0 = vector.load %arg2[%c0, %c0_0, %c1, %c0_1] : memref<1x16x18x128xbf16, #tpu.memory_space<vmem>>, vector<1x16x16x8xbf16>
    %1 = arith.extf %0 : vector<1x16x16x8xbf16> to vector<1x16x16x8xf32>
    %c0_2 = arith.constant 0 : index
    %c0_3 = arith.constant 0 : index
    %2 = vector.load %arg3[%c0_2, %c0_3] : memref<1x128xf32, #tpu.memory_space<vmem>>, vector<1x8xf32>
    %3 = vector.shape_cast %2 : vector<1x8xf32> to vector<1x1x1x8xf32>
    %4 = vector.broadcast %3 : vector<1x1x1x8xf32> to vector<1x16x16x8xf32>
    %5 = arith.mulf %1, %4 : vector<1x16x16x8xf32>
    %c0_4 = arith.constant 0 : index
    %c0_5 = arith.constant 0 : index
    %6 = vector.load %arg4[%c0_4, %c0_5] : memref<1x128xf32, #tpu.memory_space<vmem>>, vector<1x8xf32>
    %7 = vector.shape_cast %6 : vector<1x8xf32> to vector<1x1x1x8xf32>
    %8 = vector.broadcast %7 : vector<1x1x1x8xf32> to vector<1x16x16x8xf32>
    %9 = arith.addf %5, %8 : vector<1x16x16x8xf32>
    %cst = arith.constant 0.000000e+00 : f32
    %10 = vector.broadcast %cst : f32 to vector<1x16x16x8xf32>
    %11 = arith.maximumf %9, %10 : vector<1x16x16x8xf32>
    %c0_6 = arith.constant 0 : index
    %c0_7 = arith.constant 0 : index
    %c0_8 = arith.constant 0 : index
    %c0_9 = arith.constant 0 : index
    %12 = vector.load %arg5[%c0_6, %c0_7, %c0_8, %c0_9] : memref<1x16x16x8xf32, #tpu.memory_space<vmem>>, vector<1x16x16x8xf32>
    tpu.vector_store %arg5[%c0_6, %c0_7, %c0_8, %c0_9], %11 {strides = array<i32>} : memref<1x16x16x8xf32, #tpu.memory_space<vmem>>, vector<1x16x16x8xf32>,
    return
  }
  func.func @transform_0(%arg0: i32, %arg1: i32) -> (i32, i32, i32, i32) {
    %c0_i32 = arith.constant 0 : i32
    %c0_i32_0 = arith.constant 0 : i32
    %c0_i32_1 = arith.constant 0 : i32
    return %arg0, %arg1, %c0_i32, %c0_i32_0 : i32, i32, i32, i32
  }
  func.func @transform_1(%arg0: i32, %arg1: i32) -> (i32, i32) {
    %c0_i32 = arith.constant 0 : i32
    %c0_i32_0 = arith.constant 0 : i32
    %c0_i32_1 = arith.constant 0 : i32
    return %c0_i32, %c0_i32_0 : i32, i32
  }
  func.func @transform_2(%arg0: i32, %arg1: i32) -> (i32, i32) {
    %c0_i32 = arith.constant 0 : i32
    %c0_i32_0 = arith.constant 0 : i32
    %c0_i32_1 = arith.constant 0 : i32
    return %c0_i32, %c0_i32_0 : i32, i32
  }
  func.func @transform_3(%arg0: i32, %arg1: i32) -> (i32, i32, i32, i32) {
    %c0_i32 = arith.constant 0 : i32
    %c0_i32_0 = arith.constant 0 : i32
    %c0_i32_1 = arith.constant 0 : i32
    return %arg0, %arg1, %c0_i32, %c0_i32_0 : i32, i32, i32, i32
  }
}

module attributes {stable_mosaic.version = 11 : i64} {
  func.func @_conv_stats_kernel(%arg0: i32, %arg1: i32, %arg2: memref<1x326x16xf32, #tpu.memory_space<vmem>>, %arg3: memref<144x128xbf16, #tpu.memory_space<vmem>>, %arg4: memref<96x1xf32, #tpu.memory_space<vmem>>, %arg5: memref<1x96x128xbf16, #tpu.memory_space<vmem>>, %arg6: memref<1x1x128xf32, #tpu.memory_space<vmem>>, %arg7: memref<1x1x128xf32, #tpu.memory_space<vmem>>, %arg8: memref<96x144xbf16, #tpu.memory_space<vmem>>) attributes {dimension_semantics = [#tpu.dimension_semantics<parallel>, #tpu.dimension_semantics<arbitrary>], iteration_bounds = array<i64: 2, 3>, scalar_prefetch = 0 : i64, scratch_operands = 1 : i64, tpu.core_type = #tpu.core_type<tc>, window_params = [{transform_indices = @transform_0, window_bounds = array<i64: 1, 326, 16>}, {pipeline_mode = #tpu.pipeline_mode<synchronous>, transform_indices = @transform_1, window_bounds = array<i64: 144, 128>}, {transform_indices = @transform_2, window_bounds = array<i64: 96, 1>}, {transform_indices = @transform_3, window_bounds = array<i64: 1, 96, 128>}, {transform_indices = @transform_4, window_bounds = array<i64: 1, 1, 128>}, {transform_indices = @transform_5, window_bounds = array<i64: 1, 1, 128>}]} {
    %c0_i32 = arith.constant 0 : i32
    %0 = arith.cmpi eq, %arg1, %c0_i32 : i32
    %1 = arith.extui %0 : i1 to i32
    %c0_i32_0 = arith.constant 0 : i32
    %2 = arith.cmpi ne, %1, %c0_i32_0 : i32
    scf.if %2 {
      %cst_65 = arith.constant 0.000000e+00 : f32
      %95 = vector.broadcast %cst_65 : f32 to vector<1x1x128xf32>
      %c0_66 = arith.constant 0 : index
      %c0_67 = arith.constant 0 : index
      %c0_68 = arith.constant 0 : index
      %96 = vector.load %arg6[%c0_66, %c0_67, %c0_68] : memref<1x1x128xf32, #tpu.memory_space<vmem>>, vector<1x1x128xf32>
      tpu.vector_store %arg6[%c0_66, %c0_67, %c0_68], %95 {strides = array<i32>} : memref<1x1x128xf32, #tpu.memory_space<vmem>>, vector<1x1x128xf32>,
      %cst_69 = arith.constant 0.000000e+00 : f32
      %97 = vector.broadcast %cst_69 : f32 to vector<1x1x128xf32>
      %c0_70 = arith.constant 0 : index
      %c0_71 = arith.constant 0 : index
      %c0_72 = arith.constant 0 : index
      %98 = vector.load %arg7[%c0_70, %c0_71, %c0_72] : memref<1x1x128xf32, #tpu.memory_space<vmem>>, vector<1x1x128xf32>
      tpu.vector_store %arg7[%c0_70, %c0_71, %c0_72], %97 {strides = array<i32>} : memref<1x1x128xf32, #tpu.memory_space<vmem>>, vector<1x1x128xf32>,
    } else {
    }
    %c96_i32 = arith.constant 96 : i32
    %3 = arith.muli %arg1, %c96_i32 : i32
    %4 = tpu.assume_multiple %3, 8 : i32
    %c0_i32_1 = arith.constant 0 : i32
    %5 = arith.addi %4, %c0_i32_1 : i32
    %c0_i32_2 = arith.constant 0 : i32
    %6 = arith.addi %5, %c0_i32_2 : i32
    %c0 = arith.constant 0 : index
    %7 = arith.index_cast %6 : i32 to index
    %c0_3 = arith.constant 0 : index
    %8 = vector.load %arg2[%c0, %7, %c0_3] : memref<1x326x16xf32, #tpu.memory_space<vmem>>, vector<1x96x16xf32>
    %9 = vector.shape_cast %8 : vector<1x96x16xf32> to vector<96x16xf32>
    %10 = arith.truncf %9 : vector<96x16xf32> to vector<96x16xbf16>
    %c0_4 = arith.constant 0 : index
    %c0_5 = arith.constant 0 : index
    %11 = vector.load %arg8[%c0_4, %c0_5] : memref<96x144xbf16, #tpu.memory_space<vmem>>, vector<96x16xbf16>
    tpu.vector_store %arg8[%c0_4, %c0_5], %10 {strides = array<i32>} : memref<96x144xbf16, #tpu.memory_space<vmem>>, vector<96x16xbf16>,
    %c0_i32_6 = arith.constant 0 : i32
    %12 = arith.addi %4, %c0_i32_6 : i32
    %c1_i32 = arith.constant 1 : i32
    %13 = arith.addi %12, %c1_i32 : i32
    %c0_7 = arith.constant 0 : index
    %14 = arith.index_cast %13 : i32 to index
    %c0_8 = arith.constant 0 : index
    %15 = vector.load %arg2[%c0_7, %14, %c0_8] : memref<1x326x16xf32, #tpu.memory_space<vmem>>, vector<1x96x16xf32>
    %16 = vector.shape_cast %15 : vector<1x96x16xf32> to vector<96x16xf32>
    %17 = arith.truncf %16 : vector<96x16xf32> to vector<96x16xbf16>
    %c0_9 = arith.constant 0 : index
    %c16 = arith.constant 16 : index
    %18 = vector.load %arg8[%c0_9, %c16] : memref<96x144xbf16, #tpu.memory_space<vmem>>, vector<96x16xbf16>
    tpu.vector_store %arg8[%c0_9, %c16], %17 {strides = array<i32>} : memref<96x144xbf16, #tpu.memory_space<vmem>>, vector<96x16xbf16>,
    %c0_i32_10 = arith.constant 0 : i32
    %19 = arith.addi %4, %c0_i32_10 : i32
    %c2_i32 = arith.constant 2 : i32
    %20 = arith.addi %19, %c2_i32 : i32
    %c0_11 = arith.constant 0 : index
    %21 = arith.index_cast %20 : i32 to index
    %c0_12 = arith.constant 0 : index
    %22 = vector.load %arg2[%c0_11, %21, %c0_12] : memref<1x326x16xf32, #tpu.memory_space<vmem>>, vector<1x96x16xf32>
    %23 = vector.shape_cast %22 : vector<1x96x16xf32> to vector<96x16xf32>
    %24 = arith.truncf %23 : vector<96x16xf32> to vector<96x16xbf16>
    %c0_13 = arith.constant 0 : index
    %c32 = arith.constant 32 : index
    %25 = vector.load %arg8[%c0_13, %c32] : memref<96x144xbf16, #tpu.memory_space<vmem>>, vector<96x16xbf16>
    tpu.vector_store %arg8[%c0_13, %c32], %24 {strides = array<i32>} : memref<96x144xbf16, #tpu.memory_space<vmem>>, vector<96x16xbf16>,
    %c18_i32 = arith.constant 18 : i32
    %26 = arith.addi %4, %c18_i32 : i32
    %c0_i32_14 = arith.constant 0 : i32
    %27 = arith.addi %26, %c0_i32_14 : i32
    %c0_15 = arith.constant 0 : index
    %28 = arith.index_cast %27 : i32 to index
    %c0_16 = arith.constant 0 : index
    %29 = vector.load %arg2[%c0_15, %28, %c0_16] : memref<1x326x16xf32, #tpu.memory_space<vmem>>, vector<1x96x16xf32>
    %30 = vector.shape_cast %29 : vector<1x96x16xf32> to vector<96x16xf32>
    %31 = arith.truncf %30 : vector<96x16xf32> to vector<96x16xbf16>
    %c0_17 = arith.constant 0 : index
    %c48 = arith.constant 48 : index
    %32 = vector.load %arg8[%c0_17, %c48] : memref<96x144xbf16, #tpu.memory_space<vmem>>, vector<96x16xbf16>
    tpu.vector_store %arg8[%c0_17, %c48], %31 {strides = array<i32>} : memref<96x144xbf16, #tpu.memory_space<vmem>>, vector<96x16xbf16>,
    %c18_i32_18 = arith.constant 18 : i32
    %33 = arith.addi %4, %c18_i32_18 : i32
    %c1_i32_19 = arith.constant 1 : i32
    %34 = arith.addi %33, %c1_i32_19 : i32
    %c0_20 = arith.constant 0 : index
    %35 = arith.index_cast %34 : i32 to index
    %c0_21 = arith.constant 0 : index
    %36 = vector.load %arg2[%c0_20, %35, %c0_21] : memref<1x326x16xf32, #tpu.memory_space<vmem>>, vector<1x96x16xf32>
    %37 = vector.shape_cast %36 : vector<1x96x16xf32> to vector<96x16xf32>
    %38 = arith.truncf %37 : vector<96x16xf32> to vector<96x16xbf16>
    %c0_22 = arith.constant 0 : index
    %c64 = arith.constant 64 : index
    %39 = vector.load %arg8[%c0_22, %c64] : memref<96x144xbf16, #tpu.memory_space<vmem>>, vector<96x16xbf16>
    tpu.vector_store %arg8[%c0_22, %c64], %38 {strides = array<i32>} : memref<96x144xbf16, #tpu.memory_space<vmem>>, vector<96x16xbf16>,
    %c18_i32_23 = arith.constant 18 : i32
    %40 = arith.addi %4, %c18_i32_23 : i32
    %c2_i32_24 = arith.constant 2 : i32
    %41 = arith.addi %40, %c2_i32_24 : i32
    %c0_25 = arith.constant 0 : index
    %42 = arith.index_cast %41 : i32 to index
    %c0_26 = arith.constant 0 : index
    %43 = vector.load %arg2[%c0_25, %42, %c0_26] : memref<1x326x16xf32, #tpu.memory_space<vmem>>, vector<1x96x16xf32>
    %44 = vector.shape_cast %43 : vector<1x96x16xf32> to vector<96x16xf32>
    %45 = arith.truncf %44 : vector<96x16xf32> to vector<96x16xbf16>
    %c0_27 = arith.constant 0 : index
    %c80 = arith.constant 80 : index
    %46 = vector.load %arg8[%c0_27, %c80] : memref<96x144xbf16, #tpu.memory_space<vmem>>, vector<96x16xbf16>
    tpu.vector_store %arg8[%c0_27, %c80], %45 {strides = array<i32>} : memref<96x144xbf16, #tpu.memory_space<vmem>>, vector<96x16xbf16>,
    %c36_i32 = arith.constant 36 : i32
    %47 = arith.addi %4, %c36_i32 : i32
    %c0_i32_28 = arith.constant 0 : i32
    %48 = arith.addi %47, %c0_i32_28 : i32
    %c0_29 = arith.constant 0 : index
    %49 = arith.index_cast %48 : i32 to index
    %c0_30 = arith.constant 0 : index
    %50 = vector.load %arg2[%c0_29, %49, %c0_30] : memref<1x326x16xf32, #tpu.memory_space<vmem>>, vector<1x96x16xf32>
    %51 = vector.shape_cast %50 : vector<1x96x16xf32> to vector<96x16xf32>
    %52 = arith.truncf %51 : vector<96x16xf32> to vector<96x16xbf16>
    %c0_31 = arith.constant 0 : index
    %c96 = arith.constant 96 : index
    %53 = vector.load %arg8[%c0_31, %c96] : memref<96x144xbf16, #tpu.memory_space<vmem>>, vector<96x16xbf16>
    tpu.vector_store %arg8[%c0_31, %c96], %52 {strides = array<i32>} : memref<96x144xbf16, #tpu.memory_space<vmem>>, vector<96x16xbf16>,
    %c36_i32_32 = arith.constant 36 : i32
    %54 = arith.addi %4, %c36_i32_32 : i32
    %c1_i32_33 = arith.constant 1 : i32
    %55 = arith.addi %54, %c1_i32_33 : i32
    %c0_34 = arith.constant 0 : index
    %56 = arith.index_cast %55 : i32 to index
    %c0_35 = arith.constant 0 : index
    %57 = vector.load %arg2[%c0_34, %56, %c0_35] : memref<1x326x16xf32, #tpu.memory_space<vmem>>, vector<1x96x16xf32>
    %58 = vector.shape_cast %57 : vector<1x96x16xf32> to vector<96x16xf32>
    %59 = arith.truncf %58 : vector<96x16xf32> to vector<96x16xbf16>
    %c0_36 = arith.constant 0 : index
    %c112 = arith.constant 112 : index
    %60 = vector.load %arg8[%c0_36, %c112] : memref<96x144xbf16, #tpu.memory_space<vmem>>, vector<96x16xbf16>
    tpu.vector_store %arg8[%c0_36, %c112], %59 {strides = array<i32>} : memref<96x144xbf16, #tpu.memory_space<vmem>>, vector<96x16xbf16>,
    %c36_i32_37 = arith.constant 36 : i32
    %61 = arith.addi %4, %c36_i32_37 : i32
    %c2_i32_38 = arith.constant 2 : i32
    %62 = arith.addi %61, %c2_i32_38 : i32
    %c0_39 = arith.constant 0 : index
    %63 = arith.index_cast %62 : i32 to index
    %c0_40 = arith.constant 0 : index
    %64 = vector.load %arg2[%c0_39, %63, %c0_40] : memref<1x326x16xf32, #tpu.memory_space<vmem>>, vector<1x96x16xf32>
    %65 = vector.shape_cast %64 : vector<1x96x16xf32> to vector<96x16xf32>
    %66 = arith.truncf %65 : vector<96x16xf32> to vector<96x16xbf16>
    %c0_41 = arith.constant 0 : index
    %c128 = arith.constant 128 : index
    %67 = vector.load %arg8[%c0_41, %c128] : memref<96x144xbf16, #tpu.memory_space<vmem>>, vector<96x16xbf16>
    tpu.vector_store %arg8[%c0_41, %c128], %66 {strides = array<i32>} : memref<96x144xbf16, #tpu.memory_space<vmem>>, vector<96x16xbf16>,
    %c0_42 = arith.constant 0 : index
    %c0_43 = arith.constant 0 : index
    %68 = vector.load %arg8[%c0_42, %c0_43] : memref<96x144xbf16, #tpu.memory_space<vmem>>, vector<96x144xbf16>
    %c0_44 = arith.constant 0 : index
    %c0_45 = arith.constant 0 : index
    %69 = vector.load %arg3[%c0_44, %c0_45] : memref<144x128xbf16, #tpu.memory_space<vmem>>, vector<144x128xbf16>
    %cst = arith.constant dense<0.000000e+00> : vector<96x128xf32>
    %70 = tpu.matmul %68, %69, %cst {dimension_numbers = #tpu.dot_dimension_numbers<[1], [0], [0], [1], [0, 0, 1, 1], [], []>} : vector<96x144xbf16>, vector<144x128xbf16>, vector<96x128xf32> -> vector<96x128xf32>
    %71 = arith.truncf %70 : vector<96x128xf32> to vector<96x128xbf16>
    %c0_46 = arith.constant 0 : index
    %c0_47 = arith.constant 0 : index
    %c0_48 = arith.constant 0 : index
    %72 = vector.load %arg5[%c0_46, %c0_47, %c0_48] : memref<1x96x128xbf16, #tpu.memory_space<vmem>>, vector<1x96x128xbf16>
    %73 = vector.shape_cast %72 : vector<1x96x128xbf16> to vector<96x128xbf16>
    %74 = vector.shape_cast %71 : vector<96x128xbf16> to vector<1x96x128xbf16>
    tpu.vector_store %arg5[%c0_46, %c0_47, %c0_48], %74 {strides = array<i32>} : memref<1x96x128xbf16, #tpu.memory_space<vmem>>, vector<1x96x128xbf16>,
    %c0_49 = arith.constant 0 : index
    %c0_50 = arith.constant 0 : index
    %75 = vector.load %arg4[%c0_49, %c0_50] : memref<96x1xf32, #tpu.memory_space<vmem>>, vector<96x1xf32>
    %76 = vector.broadcast %75 : vector<96x1xf32> to vector<96x128xf32>
    %77 = arith.mulf %70, %76 : vector<96x128xf32>
    %c0_51 = arith.constant 0 : index
    %c0_52 = arith.constant 0 : index
    %c0_53 = arith.constant 0 : index
    %78 = vector.load %arg6[%c0_51, %c0_52, %c0_53] : memref<1x1x128xf32, #tpu.memory_space<vmem>>, vector<1x1x128xf32>
    %79 = vector.shape_cast %78 : vector<1x1x128xf32> to vector<1x128xf32>
    %cst_54 = arith.constant dense<0.000000e+00> : vector<128xf32>
    %80 = vector.multi_reduction <add>, %77, %cst_54 [0] : vector<96x128xf32> to vector<128xf32>
    %81 = vector.shape_cast %80 : vector<128xf32> to vector<1x128xf32>
    %82 = arith.addf %79, %81 : vector<1x128xf32>
    %c0_55 = arith.constant 0 : index
    %c0_56 = arith.constant 0 : index
    %c0_57 = arith.constant 0 : index
    %83 = vector.load %arg6[%c0_55, %c0_56, %c0_57] : memref<1x1x128xf32, #tpu.memory_space<vmem>>, vector<1x1x128xf32>
    %84 = vector.shape_cast %83 : vector<1x1x128xf32> to vector<1x128xf32>
    %85 = vector.shape_cast %82 : vector<1x128xf32> to vector<1x1x128xf32>
    tpu.vector_store %arg6[%c0_55, %c0_56, %c0_57], %85 {strides = array<i32>} : memref<1x1x128xf32, #tpu.memory_space<vmem>>, vector<1x1x128xf32>,
    %c0_58 = arith.constant 0 : index
    %c0_59 = arith.constant 0 : index
    %c0_60 = arith.constant 0 : index
    %86 = vector.load %arg7[%c0_58, %c0_59, %c0_60] : memref<1x1x128xf32, #tpu.memory_space<vmem>>, vector<1x1x128xf32>
    %87 = vector.shape_cast %86 : vector<1x1x128xf32> to vector<1x128xf32>
    %88 = arith.mulf %77, %77 : vector<96x128xf32>
    %cst_61 = arith.constant dense<0.000000e+00> : vector<128xf32>
    %89 = vector.multi_reduction <add>, %88, %cst_61 [0] : vector<96x128xf32> to vector<128xf32>
    %90 = vector.shape_cast %89 : vector<128xf32> to vector<1x128xf32>
    %91 = arith.addf %87, %90 : vector<1x128xf32>
    %c0_62 = arith.constant 0 : index
    %c0_63 = arith.constant 0 : index
    %c0_64 = arith.constant 0 : index
    %92 = vector.load %arg7[%c0_62, %c0_63, %c0_64] : memref<1x1x128xf32, #tpu.memory_space<vmem>>, vector<1x1x128xf32>
    %93 = vector.shape_cast %92 : vector<1x1x128xf32> to vector<1x128xf32>
    %94 = vector.shape_cast %91 : vector<1x128xf32> to vector<1x1x128xf32>
    tpu.vector_store %arg7[%c0_62, %c0_63, %c0_64], %94 {strides = array<i32>} : memref<1x1x128xf32, #tpu.memory_space<vmem>>, vector<1x1x128xf32>,
    return
  }
  func.func @transform_0(%arg0: i32, %arg1: i32) -> (i32, i32, i32) {
    %c0_i32 = arith.constant 0 : i32
    %c0_i32_0 = arith.constant 0 : i32
    %c0_i32_1 = arith.constant 0 : i32
    return %arg0, %c0_i32, %c0_i32_0 : i32, i32, i32
  }
  func.func @transform_1(%arg0: i32, %arg1: i32) -> (i32, i32) {
    %c0_i32 = arith.constant 0 : i32
    %c0_i32_0 = arith.constant 0 : i32
    %c0_i32_1 = arith.constant 0 : i32
    return %c0_i32, %c0_i32_0 : i32, i32
  }
  func.func @transform_2(%arg0: i32, %arg1: i32) -> (i32, i32) {
    %c0_i32 = arith.constant 0 : i32
    %c0_i32_0 = arith.constant 0 : i32
    return %arg1, %c0_i32 : i32, i32
  }
  func.func @transform_3(%arg0: i32, %arg1: i32) -> (i32, i32, i32) {
    %c0_i32 = arith.constant 0 : i32
    %c0_i32_0 = arith.constant 0 : i32
    return %arg0, %arg1, %c0_i32 : i32, i32, i32
  }
  func.func @transform_4(%arg0: i32, %arg1: i32) -> (i32, i32, i32) {
    %c0_i32 = arith.constant 0 : i32
    %c0_i32_0 = arith.constant 0 : i32
    %c0_i32_1 = arith.constant 0 : i32
    return %arg0, %c0_i32, %c0_i32_0 : i32, i32, i32
  }
  func.func @transform_5(%arg0: i32, %arg1: i32) -> (i32, i32, i32) {
    %c0_i32 = arith.constant 0 : i32
    %c0_i32_0 = arith.constant 0 : i32
    %c0_i32_1 = arith.constant 0 : i32
    return %arg0, %c0_i32, %c0_i32_0 : i32, i32, i32
  }
}

</mosaic_0001>

<bundles_post_ra>
// kernel: conv_block.3
= control target key start
LH: loop header
LB: loop body
LE: loop exit
PB: predicated region body
PF: predicated region fallthrough
CT: control target
= control target key end

     0   :  { %s737_s12 = smov 0   ;;  %s739_s13 = smov 0   ;;  %s1020_s0 = inlined_call_operand.vmem [shape: bf16[2,16,18,128], index: 0, kind: input, shape index: {}]   ;;  %s1021_s1 = inlined_call_operand.vmem [shape: f32[1,128], index: 1, kind: input, shape index: {}]   ;;  %s1022_s2 = inlined_call_operand.vmem [shape: f32[1,128], index: 2, kind: input, shape index: {}]   ;;  %s1023_s3 = inlined_call_operand.vmem [shape: f32[2,16,16,8], index: 3, kind: output, shape index: {}]  }
   0x1   :  { %s741_s14 = smov 0  }
   0x2 LB: > { %s25_s15 = sadd.s32 1, %s711_s13  ;;  %p620_p0 = scmp.ge.s32.totalorder %s715_s14, 1  ;;  %s715_s14 = sphi %s741_s14, %s13_s14   ;;  %s711_s13 = sphi %s739_s13, %s1025_s13   ;;  %s707_s12 = sphi %s737_s12, %s1024_s12  }
   0x3   : > { %p27_p1 = scmp.ge.s32.totalorder %s25_s15, 2  ;;  %p159_p2 = scmp.lt.s32.totalorder %s715_s14, 3 }
   0x5   : > { %s1027_s15 = smov (%p27_p1, %s25_s15), 0  ;;  %p160_p3 = pnand %p620_p0, %p159_p2 }
   0x6   : > { %p194_p4 = scmp.lt.s32.totalorder (!%p160_p3), %s707_s12, 1 }
   0x7   : > { %163 = sbr.rel (%p160_p3) target bundleno = 70 (0x46), region = 32 }
   0xc   : > { %s1029_s12 = smov (!%p194_p4, %s707_s12), 1  ;;  %v766_v0 = vld [vmem:[%s1021_s1] ss:$0 sm:$0xff]  ;;  %vm469_vm0 = vcmask 64513   ;;  %vm471_vm1 = vcmask 64512   ;;  %vm473_vm2 = vcmask 57344  }
   0xd   : > { %s668_s16 = smul.u32 192, %s1029_s12  ;;  %v776_v10 = vld [vmem:[%s1022_s2] ss:$0 sm:$0xff]  ;;  %s628_s24 = sshll.u32 %s1029_s12, 8 }
   0xe   : > { %s795_s27 = scalar_lea.vmem %s1023_s3, %s628_s24 }
   0xf   : > { %s761_s19 = scalar_lea.vmem %s1020_s0, %s668_s16 }
  0x10   : > { %v630_v1 = vld [vmem:[%s761_s19] sm:$0xff]   ;;  %v217_v2 = vld [vmem:[%s761_s19 + $0x8] sm:$0x1]  ;;  %v218_v3 = vld [vmem:[%s761_s19 + $0xc] sm:$0xff]  }
  0x11   : > { %v631_v4 = vunpack.c.l.bf16 %v630_v1  ;;  %v632_v5 = vunpack.c.h.bf16 %v630_v1  ;;  %v265_v6 = vunpack.c.l.bf16 %v217_v2  ;;  %v266_v7 = vunpack.c.l.bf16 %v218_v3  ;;  %v220_v8 = vld [vmem:[%s761_s19 + $0x14] sm:$0x1]  ;;  %v661_v9 = vld [vmem:[%s761_s19 + $0x18] sm:$0xff]   ;;  %v223_v27 = vld [vmem:[%s761_s19 + $0x20] sm:$0x1] }
  0x12   : > { %v267_v11 = vunpack.c.h.bf16 %v218_v3  ;;  %v268_v12 = vunpack.c.l.bf16 %v220_v8  ;;  %v635_v13 = vunpack.c.l.bf16 %v661_v9  ;;  %v636_v14 = vunpack.c.h.bf16 %v661_v9  ;;  %v224_v32 = vld [vmem:[%s761_s19 + $0x24] sm:$0xff]   ;;  %v226_v33 = vld [vmem:[%s761_s19 + $0x2c] sm:$0x1]  ;;  %v229_v34 = vld [vmem:[%s761_s19 + $0x38] sm:$0x1] }
  0x13   : > { %v318_v15 = vmul.f32 %v631_v4, %v766_v0  ;;  %v319_v16 = vmul.f32 %v632_v5, %v766_v0  ;;  %v320_v17 = vmul.f32 %v766_v0, %v265_v6  ;;  %v321_v18 = vmul.f32 %v766_v0, %v266_v7  ;;  %v662_v39 = vld [vmem:[%s761_s19 + $0x30] sm:$0xff]   ;;  %v806_v40 = vld [vmem:[%s761_s19 + $0x3c] sm:$0xff]   ;;  %v232_v2 = vld [vmem:[%s761_s19 + $0x44] sm:$0x1] }
  0x14   : > { %v322_v19 = vmul.f32 %v766_v0, %v267_v11  ;;  %v323_v20 = vmul.f32 %v766_v0, %v268_v12  ;;  %v324_v21 = vmul.f32 %v635_v13, %v766_v0  ;;  %v325_v22 = vmul.f32 %v636_v14, %v766_v0  ;;  %v663_v7 = vld [vmem:[%s761_s19 + $0x48] sm:$0xff]   ;;  %v235_v8 = vld [vmem:[%s761_s19 + $0x50] sm:$0x1]  ;;  %v236_v9 = vld [vmem:[%s761_s19 + $0x54] sm:$0xff]  }
  0x15   : > { %v373_v23 = vadd.f32 %v776_v10, %v318_v15  ;;  %v374_v24 = vadd.f32 %v776_v10, %v319_v16  ;;  %v375_v25 = vadd.f32 %v776_v10, %v320_v17  ;;  %v376_v26 = vadd.f32 %v776_v10, %v321_v18  ;;  %v238_v15 = vld [vmem:[%s761_s19 + $0x5c] sm:$0x1] }
  0x16   : > { %v377_v28 = vadd.f32 %v776_v10, %v322_v19  ;;  %v378_v29 = vadd.f32 %v776_v10, %v323_v20  ;;  %v379_v30 = vadd.f32 %v776_v10, %v324_v21  ;;  %v380_v31 = vadd.f32 %v776_v10, %v325_v22 }
  0x17   : > { %v421_v35 = vmax.f32 %v373_v23, 0.0  ;;  %v422_v36 = vmax.f32 %v374_v24, 0.0  ;;  %v423_v37 = vmax.f32 %v375_v25, 0.0  ;;  %v424_v38 = vmax.f32 %v376_v26, 0.0 }
  0x18   : > { %v425_v41 = vmax.f32 %v377_v28, 0.0  ;;  %v426_v42 = vmax.f32 %v378_v29, 0.0  ;;  %v427_v43 = vmax.f32 %v379_v30, 0.0  ;;  %v428_v44 = vmax.f32 %v380_v31, 0.0 }
  0x19   : > { %470 = vst.msk [vmem:[%s795_s27 - $0x1] sm:$0xfe] %vm469_vm0, %v421_v35  ;;  %475 = vst.msk [vmem:[%s795_s27 + $0xf] sm:$0xfe] %vm469_vm0, %v424_v38  ;;  %v271_v45 = vunpack.c.l.bf16 %v223_v27  ;;  %v272_v46 = vunpack.c.l.bf16 %v224_v32  ;;  %v273_v47 = vunpack.c.h.bf16 %v224_v32  ;;  %v274_v48 = vunpack.c.l.bf16 %v226_v33 }
  0x1a   : > { %472 = vst.msk [vmem:[%s795_s27 + $0x7] sm:$0xff] %vm471_vm1, %v422_v36  ;;  %476 = vst.msk [vmem:[%s795_s27 + $0x17] sm:$0xff] %vm471_vm1, %v425_v41  ;;  %v639_v49 = vunpack.c.l.bf16 %v662_v39  ;;  %v640_v50 = vunpack.c.h.bf16 %v662_v39  ;;  %v277_v51 = vunpack.c.l.bf16 %v229_v34  ;;  %v278_v52 = vunpack.c.l.bf16 %v806_v40 }
  0x1b   : > { %474 = vst.msk [vmem:[%s795_s27 + $0xf] sm:$0x1] %vm473_vm2, %v423_v37  ;;  %477 = vst.msk [vmem:[%s795_s27 + $0x1f] sm:$0x1] %vm473_vm2, %v426_v42  ;;  %v326_v53 = vmul.f32 %v766_v0, %v271_v45  ;;  %v327_v54 = vmul.f32 %v766_v0, %v272_v46  ;;  %v328_v55 = vmul.f32 %v766_v0, %v273_v47  ;;  %v279_v20 = vunpack.c.h.bf16 %v806_v40  ;;  %v664_v40 = vld [vmem:[%s761_s19 + $0x60] sm:$0xff]   ;;  %v242_v46 = vld [vmem:[%s761_s19 + $0x6c] sm:$0xff]  }
  0x1c   : > { %478 = vst.msk [vmem:[%s795_s27 + $0x1f] sm:$0xfe] %vm469_vm0, %v427_v43  ;;  %v329_v56 = vmul.f32 %v766_v0, %v274_v48  ;;  %v330_v57 = vmul.f32 %v639_v49, %v766_v0  ;;  %v331_v58 = vmul.f32 %v640_v50, %v766_v0  ;;  %v332_v59 = vmul.f32 %v766_v0, %v277_v51  ;;  %v241_v45 = vld [vmem:[%s761_s19 + $0x68] sm:$0x1]  ;;  %v244_v47 = vld [vmem:[%s761_s19 + $0x74] sm:$0x1] }
  0x1d   : > { %479 = vst.msk [vmem:[%s795_s27 + $0x27] sm:$0xff] %vm471_vm1, %v428_v44  ;;  %v333_v60 = vmul.f32 %v766_v0, %v278_v52  ;;  %v381_v61 = vadd.f32 %v776_v10, %v326_v53  ;;  %v382_v62 = vadd.f32 %v776_v10, %v327_v54  ;;  %v383_v63 = vadd.f32 %v776_v10, %v328_v55  ;;  %v665_v52 = vld [vmem:[%s761_s19 + $0x78] sm:$0xff]  }
  0x1e   : > { %v384_v1 = vadd.f32 %v776_v10, %v329_v56  ;;  %v385_v3 = vadd.f32 %v776_v10, %v330_v57  ;;  %v386_v4 = vadd.f32 %v776_v10, %v331_v58  ;;  %v387_v5 = vadd.f32 %v776_v10, %v332_v59 }
  0x1f   : > { %v388_v6 = vadd.f32 %v776_v10, %v333_v60  ;;  %v429_v11 = vmax.f32 %v381_v61, 0.0  ;;  %v430_v12 = vmax.f32 %v382_v62, 0.0  ;;  %v431_v13 = vmax.f32 %v383_v63, 0.0 }
  0x20   : > { %v432_v14 = vmax.f32 %v384_v1, 0.0  ;;  %v433_v16 = vmax.f32 %v385_v3, 0.0  ;;  %v434_v17 = vmax.f32 %v386_v4, 0.0  ;;  %v435_v18 = vmax.f32 %v387_v5, 0.0 }
  0x21   : > { %v436_v19 = vmax.f32 %v388_v6, 0.0  ;;  %480 = vst.msk [vmem:[%s795_s27 + $0x2f] sm:$0x1] %vm473_vm2, %v429_v11  ;;  %v280_v21 = vunpack.c.l.bf16 %v232_v2  ;;  %v643_v22 = vunpack.c.l.bf16 %v663_v7  ;;  %v644_v23 = vunpack.c.h.bf16 %v663_v7 }
  0x22   : > { %481 = vst.msk [vmem:[%s795_s27 + $0x2f] sm:$0xfe] %vm469_vm0, %v430_v12  ;;  %484 = vst.msk [vmem:[%s795_s27 + $0x3f] sm:$0xfe] %vm469_vm0, %v433_v16  ;;  %v283_v24 = vunpack.c.l.bf16 %v235_v8  ;;  %v284_v25 = vunpack.c.l.bf16 %v236_v9  ;;  %v285_v26 = vunpack.c.h.bf16 %v236_v9  ;;  %v286_v27 = vunpack.c.l.bf16 %v238_v15  ;;  %v247_v15 = vld [vmem:[%s761_s19 + $0x80] sm:$0x1] }
  0x23   : > { %482 = vst.msk [vmem:[%s795_s27 + $0x37] sm:$0xff] %vm471_vm1, %v431_v13  ;;  %485 = vst.msk [vmem:[%s795_s27 + $0x47] sm:$0xff] %vm471_vm1, %v434_v17  ;;  %v334_v28 = vmul.f32 %v766_v0, %v279_v20  ;;  %v335_v29 = vmul.f32 %v766_v0, %v280_v21  ;;  %v336_v30 = vmul.f32 %v643_v22, %v766_v0  ;;  %v647_v57 = vunpack.c.l.bf16 %v664_v40  ;;  %v248_v20 = vld [vmem:[%s761_s19 + $0x84] sm:$0xff]   ;;  %v250_v21 = vld [vmem:[%s761_s19 + $0x8c] sm:$0x1] }
  0x24   : > { %483 = vst.msk [vmem:[%s795_s27 + $0x3f] sm:$0x1] %vm473_vm2, %v432_v14  ;;  %486 = vst.msk [vmem:[%s795_s27 + $0x4f] sm:$0x1] %vm473_vm2, %v435_v18  ;;  %v337_v31 = vmul.f32 %v644_v23, %v766_v0  ;;  %v338_v32 = vmul.f32 %v766_v0, %v283_v24  ;;  %v339_v33 = vmul.f32 %v766_v0, %v284_v25  ;;  %v648_v58 = vunpack.c.h.bf16 %v664_v40  ;;  %v253_v22 = vld [vmem:[%s761_s19 + $0x98] sm:$0x1] }
  0x25   : > { %487 = vst.msk [vmem:[%s795_s27 + $0x4f] sm:$0xfe] %vm469_vm0, %v436_v19  ;;  %v340_v34 = vmul.f32 %v766_v0, %v285_v26  ;;  %v341_v35 = vmul.f32 %v766_v0, %v286_v27  ;;  %v389_v36 = vadd.f32 %v776_v10, %v334_v28  ;;  %v390_v37 = vadd.f32 %v776_v10, %v335_v29  ;;  %v666_v27 = vld [vmem:[%s761_s19 + $0x90] sm:$0xff]   ;;  %v922_v28 = vld [vmem:[%s761_s19 + $0x9c] sm:$0xff]  }
  0x26   : > { %v391_v38 = vadd.f32 %v776_v10, %v336_v30  ;;  %v392_v39 = vadd.f32 %v776_v10, %v337_v31  ;;  %v393_v41 = vadd.f32 %v776_v10, %v338_v32  ;;  %v394_v42 = vadd.f32 %v776_v10, %v339_v33 }
  0x27   : > { %v395_v43 = vadd.f32 %v776_v10, %v340_v34  ;;  %v396_v44 = vadd.f32 %v776_v10, %v341_v35  ;;  %v437_v48 = vmax.f32 %v389_v36, 0.0  ;;  %v438_v49 = vmax.f32 %v390_v37, 0.0 }
  0x28   : > { %v439_v50 = vmax.f32 %v391_v38, 0.0  ;;  %v440_v51 = vmax.f32 %v392_v39, 0.0  ;;  %v441_v53 = vmax.f32 %v393_v41, 0.0  ;;  %v442_v54 = vmax.f32 %v394_v42, 0.0 }
  0x29   : > { %v443_v55 = vmax.f32 %v395_v43, 0.0  ;;  %v444_v56 = vmax.f32 %v396_v44, 0.0  ;;  %488 = vst.msk [vmem:[%s795_s27 + $0x57] sm:$0xff] %vm471_vm1, %v437_v48  ;;  %v289_v59 = vunpack.c.l.bf16 %v241_v45  ;;  %v290_v60 = vunpack.c.l.bf16 %v242_v46 }
  0x2a   : > { %489 = vst.msk [vmem:[%s795_s27 + $0x5f] sm:$0x1] %vm473_vm2, %v438_v49  ;;  %492 = vst.msk [vmem:[%s795_s27 + $0x6f] sm:$0x1] %vm473_vm2, %v441_v53  ;;  %v291_v61 = vunpack.c.h.bf16 %v242_v46  ;;  %v292_v62 = vunpack.c.l.bf16 %v244_v47  ;;  %v651_v63 = vunpack.c.l.bf16 %v665_v52  ;;  %v652_v1 = vunpack.c.h.bf16 %v665_v52  ;;  %v256_v53 = vld [vmem:[%s761_s19 + $0xa4] sm:$0x1] }
  0x2b   : > { %490 = vst.msk [vmem:[%s795_s27 + $0x5f] sm:$0xfe] %vm469_vm0, %v439_v50  ;;  %493 = vst.msk [vmem:[%s795_s27 + $0x6f] sm:$0xfe] %vm469_vm0, %v442_v54  ;;  %v342_v2 = vmul.f32 %v647_v57, %v766_v0  ;;  %v343_v3 = vmul.f32 %v648_v58, %v766_v0  ;;  %v344_v4 = vmul.f32 %v766_v0, %v289_v59  ;;  %v295_v33 = vunpack.c.l.bf16 %v247_v15  ;;  %v667_v58 = vld [vmem:[%s761_s19 + $0xa8] sm:$0xff]  }
  0x2c   : > { %491 = vst.msk [vmem:[%s795_s27 + $0x67] sm:$0xff] %vm471_vm1, %v440_v51  ;;  %494 = vst.msk [vmem:[%s795_s27 + $0x77] sm:$0xff] %vm471_vm1, %v443_v55  ;;  %v345_v5 = vmul.f32 %v766_v0, %v290_v60  ;;  %v346_v6 = vmul.f32 %v766_v0, %v291_v61  ;;  %v347_v7 = vmul.f32 %v766_v0, %v292_v62  ;;  %v296_v34 = vunpack.c.l.bf16 %v248_v20  ;;  %v259_v59 = vld [vmem:[%s761_s19 + $0xb0] sm:$0x1]  ;;  %v260_v60 = vld [vmem:[%s761_s19 + $0xb4] sm:$0xff]  }
  0x2d   : > { %495 = vst.msk [vmem:[%s795_s27 + $0x7f] sm:$0x1] %vm473_vm2, %v444_v56  ;;  %v348_v8 = vmul.f32 %v651_v63, %v766_v0  ;;  %v349_v9 = vmul.f32 %v652_v1, %v766_v0  ;;  %v397_v11 = vadd.f32 %v776_v10, %v342_v2  ;;  %v398_v12 = vadd.f32 %v776_v10, %v343_v3  ;;  %v262_v2 = vld [vmem:[%s761_s19 + $0xbc] sm:$0x1] }
  0x2e   : > { %v399_v13 = vadd.f32 %v776_v10, %v344_v4  ;;  %v400_v14 = vadd.f32 %v776_v10, %v345_v5  ;;  %v401_v16 = vadd.f32 %v776_v10, %v346_v6  ;;  %v402_v17 = vadd.f32 %v776_v10, %v347_v7 }
  0x2f   : > { %v403_v18 = vadd.f32 %v776_v10, %v348_v8  ;;  %v404_v19 = vadd.f32 %v776_v10, %v349_v9  ;;  %v445_v23 = vmax.f32 %v397_v11, 0.0  ;;  %v446_v24 = vmax.f32 %v398_v12, 0.0 }
  0x30   : > { %v447_v25 = vmax.f32 %v399_v13, 0.0  ;;  %v448_v26 = vmax.f32 %v400_v14, 0.0  ;;  %v449_v29 = vmax.f32 %v401_v16, 0.0  ;;  %v450_v30 = vmax.f32 %v402_v17, 0.0 }
  0x31   : > { %v451_v31 = vmax.f32 %v403_v18, 0.0  ;;  %v452_v32 = vmax.f32 %v404_v19, 0.0  ;;  %496 = vst.msk [vmem:[%s795_s27 + $0x7f] sm:$0xfe] %vm469_vm0, %v445_v23  ;;  %v297_v35 = vunpack.c.h.bf16 %v248_v20  ;;  %v298_v36 = vunpack.c.l.bf16 %v250_v21 }
  0x32   : > { %497 = vst.msk [vmem:[%s795_s27 + $0x87] sm:$0xff] %vm471_vm1, %v446_v24  ;;  %500 = vst.msk [vmem:[%s795_s27 + $0x97] sm:$0xff] %vm471_vm1, %v449_v29  ;;  %v655_v37 = vunpack.c.l.bf16 %v666_v27  ;;  %v656_v38 = vunpack.c.h.bf16 %v666_v27  ;;  %v301_v39 = vunpack.c.l.bf16 %v253_v22  ;;  %v302_v40 = vunpack.c.l.bf16 %v922_v28 }
  0x33   : > { %498 = vst.msk [vmem:[%s795_s27 + $0x8f] sm:$0x1] %vm473_vm2, %v447_v25  ;;  %501 = vst.msk [vmem:[%s795_s27 + $0x9f] sm:$0x1] %vm473_vm2, %v450_v30  ;;  %v350_v41 = vmul.f32 %v766_v0, %v295_v33  ;;  %v351_v42 = vmul.f32 %v766_v0, %v296_v34  ;;  %v352_v43 = vmul.f32 %v766_v0, %v297_v35  ;;  %v303_v7 = vunpack.c.h.bf16 %v922_v28 }
  0x34   : > { %499 = vst.msk [vmem:[%s795_s27 + $0x8f] sm:$0xfe] %vm469_vm0, %v448_v26  ;;  %502 = vst.msk [vmem:[%s795_s27 + $0x9f] sm:$0xfe] %vm469_vm0, %v451_v31  ;;  %v353_v44 = vmul.f32 %v766_v0, %v298_v36  ;;  %v354_v45 = vmul.f32 %v655_v37, %v766_v0  ;;  %v355_v46 = vmul.f32 %v656_v38, %v766_v0  ;;  %v304_v8 = vunpack.c.l.bf16 %v256_v53 }
  0x35   : > { %503 = vst.msk [vmem:[%s795_s27 + $0xa7] sm:$0xff] %vm471_vm1, %v452_v32  ;;  %v356_v47 = vmul.f32 %v766_v0, %v301_v39  ;;  %v357_v48 = vmul.f32 %v766_v0, %v302_v40  ;;  %v405_v49 = vadd.f32 %v776_v10, %v350_v41  ;;  %v406_v50 = vadd.f32 %v776_v10, %v351_v42 }
  0x36   : > { %v407_v51 = vadd.f32 %v776_v10, %v352_v43  ;;  %v408_v52 = vadd.f32 %v776_v10, %v353_v44  ;;  %v409_v54 = vadd.f32 %v776_v10, %v354_v45  ;;  %v410_v55 = vadd.f32 %v776_v10, %v355_v46 }
  0x37   : > { %v411_v56 = vadd.f32 %v776_v10, %v356_v47  ;;  %v412_v57 = vadd.f32 %v776_v10, %v357_v48  ;;  %v453_v61 = vmax.f32 %v405_v49, 0.0  ;;  %v454_v62 = vmax.f32 %v406_v50, 0.0 }
  0x38   : > { %v455_v63 = vmax.f32 %v407_v51, 0.0  ;;  %v456_v1 = vmax.f32 %v408_v52, 0.0  ;;  %v457_v3 = vmax.f32 %v409_v54, 0.0  ;;  %v458_v4 = vmax.f32 %v410_v55, 0.0 }
  0x39   : > { %v459_v5 = vmax.f32 %v411_v56, 0.0  ;;  %v460_v6 = vmax.f32 %v412_v57, 0.0  ;;  %504 = vst.msk [vmem:[%s795_s27 + $0xaf] sm:$0x1] %vm473_vm2, %v453_v61  ;;  %v659_v9 = vunpack.c.l.bf16 %v667_v58  ;;  %v660_v11 = vunpack.c.h.bf16 %v667_v58 }
  0x3a   : > { %505 = vst.msk [vmem:[%s795_s27 + $0xaf] sm:$0xfe] %vm469_vm0, %v454_v62  ;;  %508 = vst.msk [vmem:[%s795_s27 + $0xbf] sm:$0xfe] %vm469_vm0, %v457_v3  ;;  %v307_v12 = vunpack.c.l.bf16 %v259_v59  ;;  %v308_v13 = vunpack.c.l.bf16 %v260_v60  ;;  %v309_v14 = vunpack.c.h.bf16 %v260_v60  ;;  %v310_v15 = vunpack.c.l.bf16 %v262_v2 }
  0x3b   : > { %506 = vst.msk [vmem:[%s795_s27 + $0xb7] sm:$0xff] %vm471_vm1, %v455_v63  ;;  %509 = vst.msk [vmem:[%s795_s27 + $0xc7] sm:$0xff] %vm471_vm1, %v458_v4  ;;  %v358_v16 = vmul.f32 %v766_v0, %v303_v7  ;;  %v359_v17 = vmul.f32 %v766_v0, %v304_v8  ;;  %v360_v18 = vmul.f32 %v659_v9, %v766_v0 }
  0x3c   : > { %507 = vst.msk [vmem:[%s795_s27 + $0xbf] sm:$0x1] %vm473_vm2, %v456_v1  ;;  %510 = vst.msk [vmem:[%s795_s27 + $0xcf] sm:$0x1] %vm473_vm2, %v459_v5  ;;  %v361_v19 = vmul.f32 %v660_v11, %v766_v0  ;;  %v362_v20 = vmul.f32 %v766_v0, %v307_v12  ;;  %v363_v21 = vmul.f32 %v766_v0, %v308_v13 }
  0x3d   : > { %511 = vst.msk [vmem:[%s795_s27 + $0xcf] sm:$0xfe] %vm469_vm0, %v460_v6  ;;  %v364_v22 = vmul.f32 %v766_v0, %v309_v14  ;;  %v365_v23 = vmul.f32 %v766_v0, %v310_v15  ;;  %v413_v24 = vadd.f32 %v776_v10, %v358_v16  ;;  %v414_v25 = vadd.f32 %v776_v10, %v359_v17 }
  0x3e   : > { %v415_v26 = vadd.f32 %v776_v10, %v360_v18  ;;  %v416_v27 = vadd.f32 %v776_v10, %v361_v19  ;;  %v417_v28 = vadd.f32 %v776_v10, %v362_v20  ;;  %v418_v29 = vadd.f32 %v776_v10, %v363_v21 }
  0x3f   : > { %v419_v0 = vadd.f32 %v776_v10, %v364_v22  ;;  %v420_v30 = vadd.f32 %v776_v10, %v365_v23  ;;  %v461_v31 = vmax.f32 %v413_v24, 0.0  ;;  %v462_v32 = vmax.f32 %v414_v25, 0.0 }
  0x40   : > { %v463_v33 = vmax.f32 %v415_v26, 0.0  ;;  %v464_v34 = vmax.f32 %v416_v27, 0.0  ;;  %v465_v35 = vmax.f32 %v417_v28, 0.0  ;;  %v466_v36 = vmax.f32 %v418_v29, 0.0 }
  0x41   : > { %v467_v37 = vmax.f32 %v419_v0, 0.0  ;;  %v468_v38 = vmax.f32 %v420_v30, 0.0  ;;  %512 = vst.msk [vmem:[%s795_s27 + $0xd7] sm:$0xff] %vm471_vm1, %v461_v31 }
  0x42   : > { %513 = vst.msk [vmem:[%s795_s27 + $0xdf] sm:$0x1] %vm473_vm2, %v462_v32  ;;  %516 = vst.msk [vmem:[%s795_s27 + $0xef] sm:$0x1] %vm473_vm2, %v465_v35 }
  0x43   : > { %514 = vst.msk [vmem:[%s795_s27 + $0xdf] sm:$0xfe] %vm469_vm0, %v463_v33  ;;  %517 = vst.msk [vmem:[%s795_s27 + $0xef] sm:$0xfe] %vm469_vm0, %v466_v36 }
  0x44   : > { %515 = vst.msk [vmem:[%s795_s27 + $0xe7] sm:$0xff] %vm471_vm1, %v464_v34  ;;  %518 = vst.msk [vmem:[%s795_s27 + $0xf7] sm:$0xff] %vm471_vm1, %v467_v37 }
  0x45   : > { %519 = vst.msk [vmem:[%s795_s27 + $0xff] sm:$0x1] %vm473_vm2, %v468_v38 }
  0x46 PF: > { %s13_s14 = sadd.s32 1, %s715_s14   ;;  %s1024_s12 = smov %s711_s13 }
  0x47   : > { %p10_p5 = scmp.ge.s32.totalorder %s13_s14, 4   ;;  %s1025_s13 = smov %s1027_s15 }
  0x49   :  { %12 = sbr.rel (!%p10_p5) target bundleno = 2 (0x2), region = 62 }

// kernel: conv_block.2
= control target key start
LH: loop header
LB: loop body
LE: loop exit
PB: predicated region body
PF: predicated region fallthrough
CT: control target
= control target key end

     0   :  { %s2325_s18 = smov 0   ;;  %s2327_s19 = smov 0   ;;  %s2829_s0 = inlined_call_operand.vmem [shape: f32[2,326,16], index: 0, kind: input, shape index: {}]   ;;  %s2830_s1 = inlined_call_operand.vmem [shape: bf16[144,128], index: 1, kind: input, shape index: {}]   ;;  %s2831_s2 = inlined_call_operand.vmem [shape: f32[288,1], index: 2, kind: input, shape index: {}]   ;;  %s2832_s3 = inlined_call_operand.vmem [shape: bf16[2,288,128], index: 3, kind: output, shape index: {0}]   ;;  %s2833_s4 = inlined_call_operand.vmem [shape: f32[2,1,128], index: 4, kind: output, shape index: {1}]   ;;  %s2834_s5 = inlined_call_operand.vmem [shape: f32[2,1,128], index: 5, kind: output, shape index: {2}]  }
   0x1   :  { %2835 = sst [smem:[#allocation3_spill]] %s2833_s4  ;;  %s2329_s20 = smov 0  }
   0x2   :  { %s2331_s21 = smov 0   ;;  %s2333_s22 = smov 0  }
   0x3 LB: > { %s25_s23 = sadd.s32 1, %s2276_s20  ;;  %s28_s24 = sadd.s32 1, %s2280_s21  ;;  %s2284_s22 = sphi %s2333_s22, %s16_s22   ;;  %s2280_s21 = sphi %s2331_s21, %s2840_s21   ;;  %s2276_s20 = sphi %s2329_s20, %s2839_s20   ;;  %s2272_s19 = sphi %s2327_s19, %s2838_s19   ;;  %s2268_s18 = sphi %s2325_s18, %s2837_s18  }
   0x4   : > { %p26_p0 = scmp.ge.s32.totalorder %s25_s23, 3  ;;  %p1746_p1 = scmp.ge.s32.totalorder %s2284_s22, 1 }
   0x5   : > { %p217_p2 = scmp.lt.s32.totalorder %s2284_s22, 7 }
   0x6   : > { %s2842_s23 = smov (%p26_p0, %s25_s23), 0  ;;  %s2844_s24 = smov (!%p26_p0, %s28_s24), %s2280_s21 }
   0x7   : > { %p218_p3 = pnand %p1746_p1, %p217_p2  ;;  %p30_p4 = scmp.ge.s32.totalorder %s2844_s24, 2 }
   0x8   : > { %p260_p5 = scmp.lt.s32.totalorder (!%p218_p3), %s2272_s19, 1  ;;  %s265_s25 = smul.u32 (!%p218_p3), 12, %s2268_s18 }
   0x9   : > { %s2846_s24 = smov (%p30_p4, %s2844_s24), 0  ;;  %221 = sbr.rel (%p218_p3) target bundleno = 538 (0x21a), region = 32 }
   0xa   : > { %p266_p6 = scmp.lt.s32.totalorder (!%p218_p3), %s265_s25, 35  ;;  %s2836_s4 = sld [smem:[#allocation3_spill]] (!%p218_p3) }
   0xb   : > { %p1750_p7 = scmp.ne.s32.totalorder (!%p218_p3), %s2268_s18, 0 }
   0xe   : > { %s2848_s19 = smov (!%p260_p5, %s2272_s19), 1  ;;  %s2850_s25 = smov (!%p266_p6, %s265_s25), 35 }
   0xf   : > { %s2169_s26 = smul.u32 328, %s2848_s19  ;;  %s1748_s9 = sshll.u32 %s2850_s25, 3 }
  0x10   : > { %s2361_s29 = scalar_lea.vmem %s2836_s4, %s2848_s19  ;;  %s2170_s8 = smul.u32 36, %s2848_s19 }
  0x11   : > { %s264_s7 = scalar_lea.vmem %s2829_s0, %s2169_s26  ;;  %s2369_s12 = scalar_lea.vmem %s2834_s5, %s2848_s19 }
  0x12   : > { %s2374_s15 = scalar_lea.vmem %s2831_s2, %s1748_s9  ;;  %s277_s16 = sadd.s32 %s2170_s8, %s2850_s25 }
  0x13   : > { %s1749_s17 = sshll.u32 %s277_s16, 2  ;;  %291 = sbr.rel (%p1750_p7) target bundleno = 26 (0x1a), region = 36 }
  0x14   : > { %s2379_s4 = scalar_lea.vmem %s2832_s3, %s1749_s17 }
  0x18   : > { %v2286_v0 = vmov 0.0  }
  0x19   : > { %292 = vst [vmem:[%s2361_s29] sm:$0x1] %v2286_v0  ;;  %293 = vst [vmem:[%s2369_s12] sm:$0x1] %v2286_v0 }
  0x1a PF: > { %s294_s19 = smul.u32 96, %s2268_s18  ;;  %v2222_v1 = vld [vmem:[%s2830_s1 + $0x38] sm:$0xff]   ;;  %v2287_v2 = vmov 0   ;;  %v2223_v3 = vld [vmem:[%s2830_s1 + $0x30] sm:$0xff]   ;;  %s2288_s18 = smov 32   ;;  %vm356_vm0 = vcmask 125952  }
  0x1b   : > { %1293 = vmatprep.subr.bf16.mxu0 %v2287_v2  ;;  %2151 = vmatprep.subr.bf16.mxu1 %v2287_v2  ;;  %s2290_s9 = smov 48   ;;  %s2291_s10 = smov 64   ;;  %v2224_v30 = vld [vmem:[%s2830_s1 + $0x28] sm:$0xff]   ;;  %v2225_v35 = vld [vmem:[%s2830_s1 + $0x20] sm:$0xff]   ;;  %v2226_v40 = vld [vmem:[%s2830_s1 + $0x18] sm:$0xff]   ;;  %vm455_vm1 = vcmask 257152  }
  0x1c   : > { %s2390_s25 = scalar_lea.vmem %s264_s7, %s294_s19  ;;  %1294 = vmatpush1.bf16.msra.mxu0 %v2222_v1  ;;  %2160 = vmatpush1.bf16.msra.mxu1 %v2222_v1  ;;  %s2289_s7 = smov 16   ;;  %v2227_v47 = vld [vmem:[%s2830_s1 + $0x10] sm:$0xff]   ;;  %v2228_v55 = vld [vmem:[%s2830_s1 + $0x8] sm:$0xff]   ;;  %v2229_v63 = vld [vmem:[%s2830_s1] sm:$0xff]   ;;  %vm554_vm2 = vcmask 388352   ;;  %vm653_vm3 = vcmask 519552  }
  0x1d   : > { %v1787_v4 = vld [vmem:[%s2390_s25 + $0x2] sm:$0xff]  ;;  %v1788_v6 = vld [vmem:[%s2390_s25 + $0xa] sm:$0xff]  ;;  %1295 = vmatprep.subr.bf16.mxu0 %v2287_v2  ;;  %2152 = vmatprep.subr.bf16.mxu1 %v2287_v2  ;;  %v1812_v12 = vld [vmem:[%s2390_s25 + $0x1a] sm:$0xff]  ;;  %s2292_s14 = smov 80   ;;  %s2293_s27 = smov 96   ;;  %vm752_vm4 = vcmask 650752  }
  0x1e   : > { %v1763_v5 = vld [vmem:[%s2390_s25 + $0x1] sm:$0xff]  ;;  %v2020_v7 = vpack.c.bf16 %v1787_v4, %v1787_v4  ;;  %v1764_v9 = vld [vmem:[%s2390_s25 + $0x9] sm:$0xff]  ;;  %2220 = vset.pattern.permute.xlu0 %v2287_v2  ;;  %2221 = vset.pattern.permute.xlu1 %v2287_v2  ;;  %v2021_v10 = vpack.c.bf16 %v1788_v6, %v1788_v6  ;;  %v1811_v13 = vld [vmem:[%s2390_s25 + $0x12] sm:$0xff]  ;;  %v2411_v14 = vpack.c.bf16 %v1812_v12, %v1812_v12  ;;  %s2294_s26 = smov 112   ;;  %vm851_vm5 = vcmask 781952  }
  0x1f   : > { %v2008_v8 = vpack.c.bf16 %v1763_v5, %v1763_v5  ;;  %v2009_v11 = vpack.c.bf16 %v1764_v9, %v1764_v9  ;;  %v2413_v15 = vpack.c.bf16 %v1811_v13, %v1811_v13  ;;  %v1836_v16 = vld [vmem:[%s2390_s25 + $0x1b] sm:$0xff]  ;;  %v1835_v17 = vld [vmem:[%s2390_s25 + $0x13] sm:$0xff]  ;;  %v1883_v25 = vld [vmem:[%s2390_s25 + $0x24] sm:$0xff]  ;;  %vm950_vm6 = vcmask 913152  }
  0x20   : > { %518 = vrot.lane.b32.xlu1 %v2020_v7, %s2288_s18  ;;  %1296 = vmatpush1.bf16.msra.mxu0 %v2223_v3  ;;  %v2045_v18 = vpack.c.bf16 %v1836_v16, %v1836_v16  ;;  %v2044_v19 = vpack.c.bf16 %v1835_v17, %v1835_v17  ;;  %v1860_v20 = vld [vmem:[%s2390_s25 + $0x1c] sm:$0xff]  ;;  %v1859_v21 = vld [vmem:[%s2390_s25 + $0x14] sm:$0xff]  ;;  %v1884_v24 = vld [vmem:[%s2390_s25 + $0x2c] sm:$0xff]  ;;  %v2436_v32 = vpack.c.bf16 %v1883_v25, %v1883_v25  ;;  %vm1049_vm7 = vcmask 1044352  }
  0x21   : > { %419 = vrot.lane.b32.xlu0 %v2008_v8, %s2289_s7  ;;  %2161 = vmatpush1.bf16.msra.mxu1 %v2223_v3  ;;  %v2057_v22 = vpack.c.bf16 %v1860_v20, %v1860_v20  ;;  %v2056_v23 = vpack.c.bf16 %v1859_v21, %v1859_v21  ;;  %v296_v26 = vld [vmem:[%s2390_s25] sm:$0xff]  ;;  %v297_v28 = vld [vmem:[%s2390_s25 + $0x8] sm:$0xff]  ;;  %v2434_v31 = vpack.c.bf16 %v1884_v24, %v1884_v24  ;;  %v1765_v39 = vld [vmem:[%s2390_s25 + $0x11] sm:$0xff]  ;;  %vm1274_vm8 = vcmask 130048  }
  0x22   : > { %1297 = vmatprep.subr.bf16.mxu0 %v2287_v2  ;;  %2153 = vmatprep.subr.bf16.mxu1 %v2287_v2  ;;  %v1996_v27 = vpack.c.bf16 %v296_v26, %v296_v26  ;;  %v1997_v29 = vpack.c.bf16 %v297_v28, %v297_v28  ;;  %v1908_v33 = vld [vmem:[%s2390_s25 + $0x2d] sm:$0xff]  ;;  %v1907_v34 = vld [vmem:[%s2390_s25 + $0x25] sm:$0xff]  ;;  %v1766_v38 = vld [vmem:[%s2390_s25 + $0x19] sm:$0xff]  ;;  %v2010_v44 = vpack.c.bf16 %v1765_v39, %v1765_v39 }
  0x23   : > { %v2081_v36 = vpack.c.bf16 %v1908_v33, %v1908_v33  ;;  %v2080_v37 = vpack.c.bf16 %v1907_v34, %v1907_v34  ;;  %v2011_v41 = vpack.c.bf16 %v1766_v38, %v1766_v38  ;;  %v299_v42 = vld [vmem:[%s2390_s25 + $0x18] sm:$0xff]  ;;  %v298_v43 = vld [vmem:[%s2390_s25 + $0x10] sm:$0xff]  ;;  %v1931_v48 = vld [vmem:[%s2390_s25 + $0x26] sm:$0xff] }
  0x24   : > { %520 = vrot.lane.b32.xlu1 %v2021_v10, %s2288_s18  ;;  %357 = vst.msk [vmem:[#allocation2] sm:$0xf] %vm356_vm0, %v1996_v27  ;;  %358 = vst.msk [vmem:[#allocation2 + $0x8] sm:$0xf] %vm356_vm0, %v1997_v29  ;;  %1298 = vmatpush1.bf16.msra.mxu0 %v2224_v30  ;;  %v1999_v45 = vpack.c.bf16 %v299_v42, %v299_v42  ;;  %v1998_v46 = vpack.c.bf16 %v298_v43, %v298_v43  ;;  %v1932_v49 = vld [vmem:[%s2390_s25 + $0x2e] sm:$0xff]  ;;  %v303_v53 = vld [vmem:[%s2390_s25 + $0x38] sm:$0xff] }
  0x25   : > { %421 = vrot.lane.b32.xlu0 %v2009_v11, %s2289_s7  ;;  %2162 = vmatpush1.bf16.msra.mxu1 %v2224_v30  ;;  %v1814_v50 = vld [vmem:[%s2390_s25 + $0x2a] sm:$0xff]  ;;  %v2092_v51 = vpack.c.bf16 %v1931_v48, %v1931_v48  ;;  %v2093_v52 = vpack.c.bf16 %v1932_v49, %v1932_v49  ;;  %v1813_v54 = vld [vmem:[%s2390_s25 + $0x22] sm:$0xff]  ;;  %v2003_v56 = vpack.c.bf16 %v303_v53, %v303_v53  ;;  %v1770_v3 = vld [vmem:[%s2390_s25 + $0x39] sm:$0xff] }
  0x26   : > { %1299 = vmatprep.subr.bf16.mxu0 %v2287_v2  ;;  %2154 = vmatprep.subr.bf16.mxu1 %v2287_v2  ;;  %360 = vst.msk [vmem:[#allocation2 + $0x18] sm:$0xf] %vm356_vm0, %v1999_v45  ;;  %359 = vst.msk [vmem:[#allocation2 + $0x10] sm:$0xf] %vm356_vm0, %v1998_v46  ;;  %v302_v57 = vld [vmem:[%s2390_s25 + $0x30] sm:$0xff]  ;;  %v2489_v59 = vpack.c.bf16 %v1814_v50, %v1814_v50  ;;  %v2491_v60 = vpack.c.bf16 %v1813_v54, %v1813_v54  ;;  %v1837_v62 = vld [vmem:[%s2390_s25 + $0x23] sm:$0xff] }
  0x27   : > { %1124 = vst.msk [vmem:[#allocation2 + $0x4] sm:$0xf] %vm356_vm0, %v2092_v51  ;;  %1125 = vst.msk [vmem:[#allocation2 + $0xc] sm:$0xf] %vm356_vm0, %v2093_v52  ;;  %v2002_v58 = vpack.c.bf16 %v302_v57, %v302_v57  ;;  %v1838_v61 = vld [vmem:[%s2390_s25 + $0x2b] sm:$0xff]  ;;  %v2046_v1 = vpack.c.bf16 %v1837_v62, %v1837_v62  ;;  %v2230_v5 = vld [vmem:[%s2830_s1 + $0x40] sm:$0xff]   ;;  %v2015_v6 = vpack.c.bf16 %v1770_v3, %v1770_v3 }
  0x28   : > { %619 = vrot.lane.b32.xlu1 %v2411_v14, %s2290_s9  ;;  %1300 = vmatpush1.bf16.msra.mxu0 %v2225_v35  ;;  %364 = vst.msk [vmem:[#allocation2 + $0x38] sm:$0xf] %vm356_vm0, %v2003_v56  ;;  %v2047_v0 = vpack.c.bf16 %v1838_v61, %v1838_v61  ;;  %v1769_v4 = vld [vmem:[%s2390_s25 + $0x31] sm:$0xff]  ;;  %v1794_v8 = vld [vmem:[%s2390_s25 + $0x3a] sm:$0xff]  ;;  %v1817_v20 = vld [vmem:[%s2390_s25 + $0x42] sm:$0xff] }
  0x29   : > { %617 = vrot.lane.b32.xlu0 %v2413_v15, %s2290_s9  ;;  %2163 = vmatpush1.bf16.msra.mxu1 %v2225_v35  ;;  %363 = vst.msk [vmem:[#allocation2 + $0x30] sm:$0xf] %vm356_vm0, %v2002_v58  ;;  %v2014_v7 = vpack.c.bf16 %v1769_v4, %v1769_v4  ;;  %v1793_v9 = vld [vmem:[%s2390_s25 + $0x32] sm:$0xff]  ;;  %v1886_v11 = vld [vmem:[%s2390_s25 + $0x3c] sm:$0xff]  ;;  %v1768_v35 = vld [vmem:[%s2390_s25 + $0x29] sm:$0xff] }
  0x2a   : > { %1301 = vmatprep.subr.bf16.mxu0 %v2287_v2  ;;  %2155 = vmatprep.subr.bf16.mxu1 %v2287_v2  ;;  %v2524_v10 = vpack.c.bf16 %v1793_v9, %v1793_v9  ;;  %v1885_v12 = vld [vmem:[%s2390_s25 + $0x34] sm:$0xff]  ;;  %v2534_v17 = vpack.c.bf16 %v1886_v11, %v1886_v11  ;;  %v300_v24 = vld [vmem:[%s2390_s25 + $0x20] sm:$0xff]  ;;  %v1866_v39 = vld [vmem:[%s2390_s25 + $0x4c] sm:$0xff] }
  0x2b   : > { %v1933_v13 = vld [vmem:[%s2390_s25 + $0x36] sm:$0xff]  ;;  %v2000_v28 = vpack.c.bf16 %v300_v24, %v300_v24  ;;  %v1938_v46 = vld [vmem:[%s2390_s25 + $0x5e] sm:$0xff]  ;;  %v305_v51 = vld [vmem:[%s2390_s25 + $0x48] sm:$0xff] }
  0x2c   : > { %718 = vrot.lane.b32.xlu1 %v2045_v18, %s2291_s10  ;;  %1302 = vmatpush1.bf16.msra.mxu0 %v2226_v40  ;;  %v2536_v18 = vpack.c.bf16 %v1885_v12, %v1885_v12  ;;  %v1910_v25 = vld [vmem:[%s2390_s25 + $0x3d] sm:$0xff]  ;;  %v1909_v26 = vld [vmem:[%s2390_s25 + $0x35] sm:$0xff]  ;;  %v2099_v48 = vpack.c.bf16 %v1938_v46, %v1938_v46  ;;  %v1935_v4 = vld [vmem:[%s2390_s25 + $0x46] sm:$0xff] }
  0x2d   : > { %716 = vrot.lane.b32.xlu0 %v2044_v19, %s2291_s10  ;;  %2164 = vmatpush1.bf16.msra.mxu1 %v2226_v40  ;;  %v1818_v19 = vld [vmem:[%s2390_s25 + $0x4a] sm:$0xff]  ;;  %361 = vst.msk [vmem:[#allocation2 + $0x20] sm:$0xf] %vm356_vm0, %v2000_v28  ;;  %v2083_v29 = vpack.c.bf16 %v1910_v25, %v1910_v25  ;;  %v2082_v30 = vpack.c.bf16 %v1909_v26, %v1909_v26  ;;  %v1890_v43 = vld [vmem:[%s2390_s25 + $0x5c] sm:$0xff]  ;;  %v1819_v9 = vld [vmem:[%s2390_s25 + $0x52] sm:$0xff] }
  0x2e   : > { %1303 = vmatprep.subr.bf16.mxu0 %v2287_v2  ;;  %2156 = vmatprep.subr.bf16.mxu1 %v2287_v2  ;;  %v2546_v21 = vpack.c.bf16 %v1818_v19, %v1818_v19  ;;  %v1865_v40 = vld [vmem:[%s2390_s25 + $0x44] sm:$0xff]  ;;  %v1937_v45 = vld [vmem:[%s2390_s25 + $0x56] sm:$0xff]  ;;  %v2582_v49 = vpack.c.bf16 %v1890_v43, %v1890_v43  ;;  %1131 = vst.msk [vmem:[#allocation2 + $0x3c] sm:$0xf] %vm356_vm0, %v2099_v48  ;;  %v1912_v11 = vld [vmem:[%s2390_s25 + $0x4d] sm:$0xff] }
  0x2f   : > { %v2062_v42 = vpack.c.bf16 %v1865_v40, %v1865_v40  ;;  %v304_v52 = vld [vmem:[%s2390_s25 + $0x40] sm:$0xff]  ;;  %v1913_v54 = vld [vmem:[%s2390_s25 + $0x55] sm:$0xff] }
  0x30   : > { %817 = vrot.lane.b32.xlu1 %v2057_v22, %s2292_s14  ;;  %1304 = vmatpush1.bf16.msra.mxu0 %v2227_v47  ;;  %v2548_v22 = vpack.c.bf16 %v1817_v20, %v1817_v20  ;;  %v1914_v53 = vld [vmem:[%s2390_s25 + $0x5d] sm:$0xff]  ;;  %v2004_v56 = vpack.c.bf16 %v304_v52, %v304_v52  ;;  %v2086_v58 = vpack.c.bf16 %v1913_v54, %v1913_v54  ;;  %v1911_v12 = vld [vmem:[%s2390_s25 + $0x45] sm:$0xff]  ;;  %v1940_v24 = vld [vmem:[%s2390_s25 + $0x6e] sm:$0xff] }
  0x31   : > { %815 = vrot.lane.b32.xlu0 %v2056_v23, %s2292_s14  ;;  %2165 = vmatpush1.bf16.msra.mxu1 %v2227_v47  ;;  %v301_v23 = vld [vmem:[%s2390_s25 + $0x28] sm:$0xff]  ;;  %v2098_v47 = vpack.c.bf16 %v1937_v45, %v1937_v45  ;;  %v2087_v57 = vpack.c.bf16 %v1914_v53, %v1914_v53  ;;  %v2101_v28 = vpack.c.bf16 %v1940_v24, %v1940_v24  ;;  %v1774_v45 = vld [vmem:[%s2390_s25 + $0x59] sm:$0xff]  ;;  %v1773_v46 = vld [vmem:[%s2390_s25 + $0x51] sm:$0xff] }
  0x32   : > { %1305 = vmatprep.subr.bf16.mxu0 %v2287_v2  ;;  %2157 = vmatprep.subr.bf16.mxu1 %v2287_v2  ;;  %v2001_v27 = vpack.c.bf16 %v301_v23, %v301_v23  ;;  %365 = vst.msk [vmem:[#allocation2 + $0x40] sm:$0xf] %vm356_vm0, %v2004_v56  ;;  %v1939_v23 = vld [vmem:[%s2390_s25 + $0x66] sm:$0xff] }
  0x33   : > { %1130 = vst.msk [vmem:[#allocation2 + $0x34] sm:$0xf] %vm356_vm0, %v2098_v47  ;;  %1133 = vst.msk [vmem:[#allocation2 + $0x4c] sm:$0xf] %vm356_vm0, %v2101_v28  ;;  %v1915_v40 = vld [vmem:[%s2390_s25 + $0x65] sm:$0xff]  ;;  %v1437_v28 = vld [vmem:[%s2374_s15 + $0x18] sm:$0xff] }
  0x34   : > { %916 = vrot.lane.b32.xlu1 %v2434_v31, %s2293_s27  ;;  %1306 = vmatpush1.bf16.msra.mxu0 %v2228_v55  ;;  %362 = vst.msk [vmem:[#allocation2 + $0x28] sm:$0xf] %vm356_vm0, %v2001_v27  ;;  %v2100_v27 = vpack.c.bf16 %v1939_v23, %v1939_v23  ;;  %v1822_v53 = vld [vmem:[%s2390_s25 + $0x6a] sm:$0xff]  ;;  %v1821_v54 = vld [vmem:[%s2390_s25 + $0x62] sm:$0xff] }
  0x35   : > { %914 = vrot.lane.b32.xlu0 %v2436_v32, %s2293_s27  ;;  %2166 = vmatpush1.bf16.msra.mxu1 %v2228_v55  ;;  %v2005_v55 = vpack.c.bf16 %v305_v51, %v305_v51  ;;  %v1434_v23 = vld [vmem:[%s2374_s15] sm:$0xff]  ;;  %v1435_v24 = vld [vmem:[%s2374_s15 + $0x8] sm:$0xff] }
  0x36   : > { %1307 = vmatprep.subr.bf16.mxu0 %v2287_v2  ;;  %2158 = vmatprep.subr.bf16.mxu1 %v2287_v2  ;;  %1132 = vst.msk [vmem:[#allocation2 + $0x44] sm:$0xf] %vm356_vm0, %v2100_v27  ;;  %v1436_v27 = vld [vmem:[%s2374_s15 + $0x10] sm:$0xff] }
  0x37   : > { %366 = vst.msk [vmem:[#allocation2 + $0x48] sm:$0xf] %vm356_vm0, %v2005_v55 }
  0x38   : > { %1015 = vrot.lane.b32.xlu1 %v2081_v36, %s2294_s26  ;;  %1308 = vmatpush1.bf16.msra.mxu0 %v2229_v63  ;;  %v1767_v36 = vld [vmem:[%s2390_s25 + $0x21] sm:$0xff] }
  0x39   : > { %1013 = vrot.lane.b32.xlu0 %v2080_v37, %s2294_s26  ;;  %2167 = vmatpush1.bf16.msra.mxu1 %v2229_v63  ;;  %v2013_v37 = vpack.c.bf16 %v1768_v35, %v1768_v35  ;;  %v2012_v38 = vpack.c.bf16 %v1767_v36, %v1767_v36  ;;  %v1772_v63 = vld [vmem:[%s2390_s25 + $0x49] sm:$0xff] }
  0x3a   : > { %1323 = vmatprep.subr.bf16.mxu0 %v2287_v2  ;;  %2159 = vmatprep.subr.bf16.mxu1 %v2287_v2  ;;  %v2522_v2 = vpack.c.bf16 %v1794_v8, %v1794_v8  ;;  %v1820_v8 = vld [vmem:[%s2390_s25 + $0x5a] sm:$0xff] }
  0x3c   : > { %425 = vrot.lane.b32.xlu1 %v2011_v41, %s2289_s7  ;;  %1324 = vmatpush2.bf16.msra.mxu0 %v2230_v5  ;;  %v2063_v41 = vpack.c.bf16 %v1866_v39, %v1866_v39  ;;  %v1916_v39 = vld [vmem:[%s2390_s25 + $0x6d] sm:$0xff] }
  0x3d   : > { %423 = vrot.lane.b32.xlu0 %v2010_v44, %s2289_s7  ;;  %2168 = vmatpush2.bf16.msra.mxu1 %v2230_v5  ;;  %v1889_v44 = vld [vmem:[%s2390_s25 + $0x54] sm:$0xff]  ;;  %v2089_v43 = vpack.c.bf16 %v1916_v39, %v1916_v39  ;;  %v1442_v39 = vld [vmem:[%s2374_s15 + $0x40] sm:$0xff] }
  0x3e   : > { %v2584_v50 = vpack.c.bf16 %v1889_v44, %v1889_v44  ;;  %v1936_v5 = vld [vmem:[%s2390_s25 + $0x4e] sm:$0xff]  ;;  %v2088_v44 = vpack.c.bf16 %v1915_v40, %v1915_v40 }
  0x3f   : > { %v1443_v40 = vld [vmem:[%s2374_s15 + $0x48] sm:$0xff] }
  0x40   : > { %524 = vrot.lane.b32.xlu1 %v2411_v14, %s2288_s18  ;;  %v1934_v14 = vld [vmem:[%s2390_s25 + $0x3e] sm:$0xff] }
  0x41   : > { %522 = vrot.lane.b32.xlu0 %v2413_v15, %s2288_s18  ;;  %v2094_v15 = vpack.c.bf16 %v1933_v13, %v1933_v13  ;;  %v2095_v16 = vpack.c.bf16 %v1934_v14, %v1934_v14 }
  0x43   : > { %1126 = vst.msk [vmem:[#allocation2 + $0x14] sm:$0xf] %vm356_vm0, %v2094_v15  ;;  %1127 = vst.msk [vmem:[#allocation2 + $0x1c] sm:$0xf] %vm356_vm0, %v2095_v16  ;;  %v2085_v15 = vpack.c.bf16 %v1912_v11, %v1912_v11  ;;  %v2084_v16 = vpack.c.bf16 %v1911_v12, %v1911_v12 }
  0x44   : > { %623 = vrot.lane.b32.xlu1 %v2489_v59, %s2290_s9 }
  0x45   : > { %621 = vrot.lane.b32.xlu0 %v2491_v60, %s2290_s9 }
  0x48   : > { %722 = vrot.lane.b32.xlu1 %v2047_v0, %s2291_s10  ;;  %v1771_v0 = vld [vmem:[%s2390_s25 + $0x41] sm:$0xff] }
  0x49   : > { %720 = vrot.lane.b32.xlu0 %v2046_v1, %s2291_s10  ;;  %v2017_v1 = vpack.c.bf16 %v1772_v63, %v1772_v63  ;;  %v2016_v3 = vpack.c.bf16 %v1771_v0, %v1771_v0  ;;  %v2233_v0 = vld [vmem:[#allocation2 + $0x4] ss:$8 sps:$4 sm:$0xff]  }
  0x4a   : > { %1976 = vmatprep.mubr.msk.bf16.mxu0 %vm1274_vm8, %v2233_v0 }
  0x4c   : > { %433 = vrot.lane.b32.xlu1 %v2015_v6, %s2289_s7  ;;  %v2096_v6 = vpack.c.bf16 %v1935_v4, %v1935_v4  ;;  %v1941_v4 = vld [vmem:[%s2390_s25 + $0x76] sm:$0xff] }
  0x4d   : > { %431 = vrot.lane.b32.xlu0 %v2014_v7, %s2289_s7  ;;  %v2097_v7 = vpack.c.bf16 %v1936_v5, %v1936_v5  ;;  %v1942_v5 = vld [vmem:[%s2390_s25 + $0x7e] sm:$0xff] }
  0x4e   : > { %1128 = vst.msk [vmem:[#allocation2 + $0x24] sm:$0xf] %vm356_vm0, %v2096_v6 }
  0x4f   : > { %1129 = vst.msk [vmem:[#allocation2 + $0x2c] sm:$0xf] %vm356_vm0, %v2097_v7 }
  0x50   : > { %821 = vrot.lane.b32.xlu1 %v2434_v31, %s2292_s14  ;;  %v1842_v31 = vld [vmem:[%s2390_s25 + $0x4b] sm:$0xff] }
  0x51   : > { %819 = vrot.lane.b32.xlu0 %v2436_v32, %s2292_s14  ;;  %v1841_v32 = vld [vmem:[%s2390_s25 + $0x43] sm:$0xff]  ;;  %v2051_v33 = vpack.c.bf16 %v1842_v31, %v1842_v31  ;;  %v1892_v31 = vld [vmem:[%s2390_s25 + $0x6c] sm:$0xff] }
  0x52   : > { %v2050_v34 = vpack.c.bf16 %v1841_v32, %v1841_v32  ;;  %v1891_v32 = vld [vmem:[%s2390_s25 + $0x64] sm:$0xff] }
  0x54   : > { %532 = vrot.lane.b32.xlu1 %v2522_v2, %s2288_s18 }
  0x55   : > { %530 = vrot.lane.b32.xlu0 %v2524_v10, %s2288_s18 }
  0x58   : > { %920 = vrot.lane.b32.xlu1 %v2534_v17, %s2293_s27 }
  0x59   : > { %918 = vrot.lane.b32.xlu0 %v2536_v18, %s2293_s27 }
  0x5c   : > { %631 = vrot.lane.b32.xlu1 %v2546_v21, %s2290_s9 }
  0x5d   : > { %629 = vrot.lane.b32.xlu0 %v2548_v22, %s2290_s9 }
  0x60   : > { %1019 = vrot.lane.b32.xlu1 %v2083_v29, %s2294_s26  ;;  %v307_v29 = vld [vmem:[%s2390_s25 + $0x58] sm:$0xff] }
  0x61   : > { %1017 = vrot.lane.b32.xlu0 %v2082_v30, %s2294_s26  ;;  %v306_v30 = vld [vmem:[%s2390_s25 + $0x50] sm:$0xff] }
  0x64   : > { %730 = vrot.lane.b32.xlu1 %v2051_v33, %s2291_s10  ;;  %v2007_v33 = vpack.c.bf16 %v307_v29, %v307_v29 }
  0x65   : > { %728 = vrot.lane.b32.xlu0 %v2050_v34, %s2291_s10  ;;  %v2006_v34 = vpack.c.bf16 %v306_v30, %v306_v30 }
  0x66   : > { %368 = vst.msk [vmem:[#allocation2 + $0x58] sm:$0xf] %vm356_vm0, %v2007_v33 }
  0x67   : > { %367 = vst.msk [vmem:[#allocation2 + $0x50] sm:$0xf] %vm356_vm0, %v2006_v34 }
  0x68   : > { %429 = vrot.lane.b32.xlu1 %v2013_v37, %s2289_s7  ;;  %v2666_v37 = vpack.c.bf16 %v1892_v31, %v1892_v31  ;;  %v1438_v31 = vld [vmem:[%s2374_s15 + $0x20] sm:$0xff] }
  0x69   : > { %427 = vrot.lane.b32.xlu0 %v2012_v38, %s2289_s7  ;;  %v2668_v38 = vpack.c.bf16 %v1891_v32, %v1891_v32  ;;  %v1439_v32 = vld [vmem:[%s2374_s15 + $0x28] sm:$0xff] }
  0x6c   : > { %829 = vrot.lane.b32.xlu1 %v2063_v41, %s2292_s14 }
  0x6d   : > { %827 = vrot.lane.b32.xlu0 %v2062_v42, %s2292_s14 }
  0x70   : > { %528 = vrot.lane.b32.xlu1 %v2489_v59, %s2288_s18  ;;  %v1840_v59 = vld [vmem:[%s2390_s25 + $0x3b] sm:$0xff] }
  0x71   : > { %526 = vrot.lane.b32.xlu0 %v2491_v60, %s2288_s18  ;;  %v1839_v60 = vld [vmem:[%s2390_s25 + $0x33] sm:$0xff]  ;;  %v2049_v61 = vpack.c.bf16 %v1840_v59, %v1840_v59  ;;  %v1846_v59 = vld [vmem:[%s2390_s25 + $0x6b] sm:$0xff] }
  0x72   : > { %v2048_v62 = vpack.c.bf16 %v1839_v60, %v1839_v60  ;;  %v1845_v60 = vld [vmem:[%s2390_s25 + $0x63] sm:$0xff] }
  0x74   : > { %928 = vrot.lane.b32.xlu1 %v2582_v49, %s2293_s27 }
  0x75   : > { %926 = vrot.lane.b32.xlu0 %v2584_v50, %s2293_s27 }
  0x78   : > { %627 = vrot.lane.b32.xlu1 %v2522_v2, %s2290_s9  ;;  %v2628_v2 = vpack.c.bf16 %v1820_v8, %v1820_v8  ;;  %v2102_v8 = vpack.c.bf16 %v1941_v4, %v1941_v4 }
  0x79   : > { %625 = vrot.lane.b32.xlu0 %v2524_v10, %s2290_s9  ;;  %v2630_v10 = vpack.c.bf16 %v1819_v9, %v1819_v9  ;;  %v2103_v9 = vpack.c.bf16 %v1942_v5, %v1942_v5 }
  0x7a   : > { %1134 = vst.msk [vmem:[#allocation2 + $0x54] sm:$0xf] %vm356_vm0, %v2102_v8 }
  0x7b   : > { %1135 = vst.msk [vmem:[#allocation2 + $0x5c] sm:$0xf] %vm356_vm0, %v2103_v9 }
  0x7c   : > { %1027 = vrot.lane.b32.xlu1 %v2087_v57, %s2294_s26  ;;  %v2043_v57 = vpack.c.bf16 %v1822_v53, %v1822_v53 }
  0x7d   : > { %1025 = vrot.lane.b32.xlu0 %v2086_v58, %s2294_s26  ;;  %v2042_v58 = vpack.c.bf16 %v1821_v54, %v1821_v54 }
  0x80   : > { %726 = vrot.lane.b32.xlu1 %v2049_v61, %s2291_s10 }
  0x81   : > { %724 = vrot.lane.b32.xlu0 %v2048_v62, %s2291_s10 }
  0x84   : > { %437 = vrot.lane.b32.xlu1 %v2017_v1, %s2289_s7  ;;  %v2055_v1 = vpack.c.bf16 %v1846_v59, %v1846_v59 }
  0x85   : > { %435 = vrot.lane.b32.xlu0 %v2016_v3, %s2289_s7  ;;  %v2054_v3 = vpack.c.bf16 %v1845_v60, %v1845_v60 }
  0x88   : > { %825 = vrot.lane.b32.xlu1 %v2534_v17, %s2292_s14  ;;  %v1844_v17 = vld [vmem:[%s2390_s25 + $0x5b] sm:$0xff] }
  0x89   : > { %823 = vrot.lane.b32.xlu0 %v2536_v18, %s2292_s14  ;;  %v1843_v18 = vld [vmem:[%s2390_s25 + $0x53] sm:$0xff] }
  0x8c   : > { %536 = vrot.lane.b32.xlu1 %v2546_v21, %s2288_s18  ;;  %v2053_v21 = vpack.c.bf16 %v1844_v17, %v1844_v17 }
  0x8d   : > { %534 = vrot.lane.b32.xlu0 %v2548_v22, %s2288_s18  ;;  %v2052_v22 = vpack.c.bf16 %v1843_v18, %v1843_v18 }
  0x90   : > { %924 = vrot.lane.b32.xlu1 %v2063_v41, %s2293_s27 }
  0x91   : > { %922 = vrot.lane.b32.xlu0 %v2062_v42, %s2293_s27 }
  0x92   : > { %v519_v13 = vpop.permute.xlu1 %518 }
  0x93   : > { %v420_v14 = vpop.permute.xlu0 %419 }
  0x94   : > { %456 = vst.msk [vmem:[#allocation2] sm:$0xf] %vm455_vm1, %v420_v14  ;;  %635 = vrot.lane.b32.xlu1 %v2628_v2, %s2290_s9 }
  0x95   : > { %633 = vrot.lane.b32.xlu0 %v2630_v10, %s2290_s9  ;;  %555 = vst.msk [vmem:[#allocation2] sm:$0xf] %vm554_vm2, %v519_v13 }
  0x96   : > { %v521_v19 = vpop.permute.xlu1 %520 }
  0x97   : > { %v422_v20 = vpop.permute.xlu0 %421 }
  0x98   : > { %457 = vst.msk [vmem:[#allocation2 + $0x8] sm:$0xf] %vm455_vm1, %v422_v20  ;;  %1023 = vrot.lane.b32.xlu1 %v2085_v15, %s2294_s26  ;;  %v1918_v15 = vld [vmem:[%s2390_s25 + $0x7d] sm:$0xff] }
  0x99   : > { %1021 = vrot.lane.b32.xlu0 %v2084_v16, %s2294_s26  ;;  %556 = vst.msk [vmem:[#allocation2 + $0x8] sm:$0xf] %vm554_vm2, %v521_v19  ;;  %v1917_v16 = vld [vmem:[%s2390_s25 + $0x75] sm:$0xff]  ;;  %v2091_v19 = vpack.c.bf16 %v1918_v15, %v1918_v15 }
  0x9a   : > { %v620_v25 = vpop.permute.xlu1 %619  ;;  %v2090_v20 = vpack.c.bf16 %v1917_v16, %v1917_v16 }
  0x9b   : > { %v618_v26 = vpop.permute.xlu0 %617  ;;  %655 = vst.msk [vmem:[#allocation2 + $0x8] sm:$0xf] %vm653_vm3, %v620_v25 }
  0x9c   : > { %654 = vst.msk [vmem:[#allocation2] sm:$0xf] %vm653_vm3, %v618_v26  ;;  %734 = vrot.lane.b32.xlu1 %v2053_v21, %s2291_s10 }
  0x9d   : > { %732 = vrot.lane.b32.xlu0 %v2052_v22, %s2291_s10 }
  0x9e   : > { %v719_v35 = vpop.permute.xlu1 %718 }
  0x9f   : > { %v717_v36 = vpop.permute.xlu0 %716  ;;  %754 = vst.msk [vmem:[#allocation2 + $0x8] sm:$0xf] %vm752_vm4, %v719_v35  ;;  %v1440_v35 = vld [vmem:[%s2374_s15 + $0x30] sm:$0xff] }
  0xa0   : > { %753 = vst.msk [vmem:[#allocation2] sm:$0xf] %vm752_vm4, %v717_v36  ;;  %833 = vrot.lane.b32.xlu1 %v2582_v49, %s2292_s14  ;;  %v2019_v49 = vpack.c.bf16 %v1774_v45, %v1774_v45  ;;  %v1441_v36 = vld [vmem:[%s2374_s15 + $0x38] sm:$0xff] }
  0xa1   : > { %831 = vrot.lane.b32.xlu0 %v2584_v50, %s2292_s14  ;;  %v2018_v50 = vpack.c.bf16 %v1773_v46, %v1773_v46 }
  0xa2   : > { %v818_v41 = vpop.permute.xlu1 %817 }
  0xa3   : > { %v816_v42 = vpop.permute.xlu0 %815  ;;  %853 = vst.msk [vmem:[#allocation2 + $0x8] sm:$0xf] %vm851_vm5, %v818_v41 }
  0xa4   : > { %852 = vst.msk [vmem:[#allocation2] sm:$0xf] %vm851_vm5, %v816_v42  ;;  %932 = vrot.lane.b32.xlu1 %v2666_v37, %s2293_s27 }
  0xa5   : > { %930 = vrot.lane.b32.xlu0 %v2668_v38, %s2293_s27 }
  0xa6   : > { %v917_v47 = vpop.permute.xlu1 %916 }
  0xa7   : > { %v915_v48 = vpop.permute.xlu0 %914  ;;  %952 = vst.msk [vmem:[#allocation2 + $0x8] sm:$0xf] %vm950_vm6, %v917_v47 }
  0xa8   : > { %951 = vst.msk [vmem:[#allocation2] sm:$0xf] %vm950_vm6, %v915_v48  ;;  %1031 = vrot.lane.b32.xlu1 %v2089_v43, %s2294_s26  ;;  %v1444_v43 = vld [vmem:[%s2374_s15 + $0x50] sm:$0xff] }
  0xa9   : > { %1029 = vrot.lane.b32.xlu0 %v2088_v44, %s2294_s26  ;;  %v2234_v48 = vld [vmem:[#allocation2 + $0x14] ss:$8 sps:$4 sm:$0xff]  }
  0xaa   : > { %v1016_v51 = vpop.permute.xlu1 %1015 }
  0xab   : > { %v1014_v52 = vpop.permute.xlu0 %1013  ;;  %1051 = vst.msk [vmem:[#allocation2 + $0x8] sm:$0xf] %vm1049_vm7, %v1016_v51 }
  0xac   : > { %1050 = vst.msk [vmem:[#allocation2] sm:$0xf] %vm1049_vm7, %v1014_v52  ;;  %441 = vrot.lane.b32.xlu1 %v2019_v49, %s2289_s7 }
  0xad   : > { %439 = vrot.lane.b32.xlu0 %v2018_v50, %s2289_s7 }
  0xae   : > { %v426_v55 = vpop.permute.xlu1 %425 }
  0xaf   : > { %v424_v56 = vpop.permute.xlu0 %423  ;;  %459 = vst.msk [vmem:[#allocation2 + $0x18] sm:$0xf] %vm455_vm1, %v426_v55 }
  0xb0   : > { %458 = vst.msk [vmem:[#allocation2 + $0x10] sm:$0xf] %vm455_vm1, %v424_v56  ;;  %540 = vrot.lane.b32.xlu1 %v2628_v2, %s2288_s18  ;;  %v1894_v2 = vld [vmem:[%s2390_s25 + $0x7c] sm:$0xff] }
  0xb1   : > { %538 = vrot.lane.b32.xlu0 %v2630_v10, %s2288_s18  ;;  %v1893_v10 = vld [vmem:[%s2390_s25 + $0x74] sm:$0xff]  ;;  %v2079_v13 = vpack.c.bf16 %v1894_v2, %v1894_v2 }
  0xb2   : > { %v525_v61 = vpop.permute.xlu1 %524  ;;  %v2078_v14 = vpack.c.bf16 %v1893_v10, %v1893_v10 }
  0xb3   : > { %v523_v62 = vpop.permute.xlu0 %522  ;;  %v2231_v63 = vld [vmem:[#allocation2] ss:$8 sps:$4 sm:$0xff]   ;;  %558 = vst.msk [vmem:[#allocation2 + $0x18] sm:$0xf] %vm554_vm2, %v525_v61 }
  0xb4   : > { %557 = vst.msk [vmem:[#allocation2 + $0x10] sm:$0xf] %vm554_vm2, %v523_v62  ;;  %639 = vrot.lane.b32.xlu1 %v2043_v57, %s2290_s9  ;;  %1326 = vmatmul.mubr.bf16.vlgmr.msra.gmra.mxu0 %v2231_v63 }
  0xb5   : > { %637 = vrot.lane.b32.xlu0 %v2042_v58, %s2290_s9  ;;  %1977 = vmatprep.mubr.msk.bf16.mxu0 %vm1274_vm8, %v2234_v48 }
  0xb6   : > { %v624_v6 = vpop.permute.xlu1 %623 }
  0xb7   : > { %v622_v7 = vpop.permute.xlu0 %621  ;;  %657 = vst.msk [vmem:[#allocation2 + $0x18] sm:$0xf] %vm653_vm3, %v624_v6 }
  0xb8   : > { %656 = vst.msk [vmem:[#allocation2 + $0x10] sm:$0xf] %vm653_vm3, %v622_v7  ;;  %738 = vrot.lane.b32.xlu1 %v2055_v1, %s2291_s10  ;;  %v2238_v1 = vld [vmem:[#allocation2 + $0x34] ss:$8 sps:$4 sm:$0xff]  }
  0xb9   : > { %736 = vrot.lane.b32.xlu0 %v2054_v3, %s2291_s10  ;;  %v1445_v3 = vld [vmem:[%s2374_s15 + $0x58] sm:$0xff]  ;;  %1979 = vmatprep.mubr.msk.bf16.mxu1 %vm1274_vm8, %v2238_v1 }
  0xba   : > { %v723_v11 = vpop.permute.xlu1 %722 }
  0xbb   : > { %v721_v12 = vpop.permute.xlu0 %720  ;;  %756 = vst.msk [vmem:[#allocation2 + $0x18] sm:$0xf] %vm752_vm4, %v723_v11 }
  0xbc   : > { %755 = vst.msk [vmem:[#allocation2 + $0x10] sm:$0xf] %vm752_vm4, %v721_v12  ;;  %837 = vrot.lane.b32.xlu1 %v2666_v37, %s2292_s14 }
  0xbd   : > { %835 = vrot.lane.b32.xlu0 %v2668_v38, %s2292_s14 }
  0xbe   : > { %v434_v17 = vpop.permute.xlu1 %433 }
  0xbf   : > { %v432_v18 = vpop.permute.xlu0 %431  ;;  %463 = vst.msk [vmem:[#allocation2 + $0x38] sm:$0xf] %vm455_vm1, %v434_v17 }
  0xc0   : > { %462 = vst.msk [vmem:[#allocation2 + $0x30] sm:$0xf] %vm455_vm1, %v432_v18  ;;  %936 = vrot.lane.b32.xlu1 %v2079_v13, %s2293_s27 }
  0xc1   : > { %934 = vrot.lane.b32.xlu0 %v2078_v14, %s2293_s27 }
  0xc2   : > { %v822_v21 = vpop.permute.xlu1 %821 }
  0xc3   : > { %v820_v22 = vpop.permute.xlu0 %819  ;;  %855 = vst.msk [vmem:[#allocation2 + $0x18] sm:$0xf] %vm851_vm5, %v822_v21 }
  0xc4   : > { %854 = vst.msk [vmem:[#allocation2 + $0x10] sm:$0xf] %vm851_vm5, %v820_v22  ;;  %1035 = vrot.lane.b32.xlu1 %v2091_v19, %s2294_s26  ;;  %v2239_v19 = vld [vmem:[#allocation2 + $0x24] ss:$8 sps:$4 sm:$0xff]  }
  0xc5   : > { %1033 = vrot.lane.b32.xlu0 %v2090_v20, %s2294_s26 }
  0xc6   : > { %v533_v25 = vpop.permute.xlu1 %532 }
  0xc7   : > { %v531_v26 = vpop.permute.xlu0 %530  ;;  %562 = vst.msk [vmem:[#allocation2 + $0x38] sm:$0xf] %vm554_vm2, %v533_v25 }
  0xc8   : > { %561 = vst.msk [vmem:[#allocation2 + $0x30] sm:$0xf] %vm554_vm2, %v531_v26  ;;  %1453 = vperm.xlu1 %2221, %v1435_v24  }
  0xc9   : > { %1448 = vperm.xlu0 %2220, %v1434_v23  }
  0xca   : > { %v921_v29 = vpop.permute.xlu1 %920 }
  0xcb   : > { %v919_v30 = vpop.permute.xlu0 %918  ;;  %954 = vst.msk [vmem:[#allocation2 + $0x18] sm:$0xf] %vm950_vm6, %v921_v29 }
  0xcc   : > { %953 = vst.msk [vmem:[#allocation2 + $0x10] sm:$0xf] %vm950_vm6, %v919_v30  ;;  %1458 = vperm.xlu1 %2221, %v1436_v27  }
  0xcd   : > { %1463 = vperm.xlu0 %2220, %v1437_v28  }
  0xce   : > { %v632_v33 = vpop.permute.xlu1 %631 }
  0xcf   : > { %v630_v34 = vpop.permute.xlu0 %629  ;;  %661 = vst.msk [vmem:[#allocation2 + $0x38] sm:$0xf] %vm653_vm3, %v632_v33 }
  0xd0   : > { %660 = vst.msk [vmem:[#allocation2 + $0x30] sm:$0xf] %vm653_vm3, %v630_v34  ;;  %1468 = vperm.xlu1 %2221, %v1438_v31   ;;  %v2241_v31 = vld [vmem:[#allocation2 + $0x44] ss:$8 sps:$4 sm:$0xff]  }
  0xd1   : > { %1473 = vperm.xlu0 %2220, %v1439_v32  }
  0xd2   : > { %v1020_v37 = vpop.permute.xlu1 %1019 }
  0xd3   : > { %v1018_v38 = vpop.permute.xlu0 %1017  ;;  %1053 = vst.msk [vmem:[#allocation2 + $0x18] sm:$0xf] %vm1049_vm7, %v1020_v37 }
  0xd4   : > { %1052 = vst.msk [vmem:[#allocation2 + $0x10] sm:$0xf] %vm1049_vm7, %v1018_v38  ;;  %1478 = vperm.xlu1 %2221, %v1440_v35  }
  0xd5   : > { %1483 = vperm.xlu0 %2220, %v1441_v36  }
  0xd6   : > { %v731_v41 = vpop.permute.xlu1 %730 }
  0xd7   : > { %v729_v42 = vpop.permute.xlu0 %728  ;;  %760 = vst.msk [vmem:[#allocation2 + $0x38] sm:$0xf] %vm752_vm4, %v731_v41 }
  0xd8   : > { %759 = vst.msk [vmem:[#allocation2 + $0x30] sm:$0xf] %vm752_vm4, %v729_v42  ;;  %1488 = vperm.xlu1 %2221, %v1442_v39  }
  0xd9   : > { %1493 = vperm.xlu0 %2220, %v1443_v40  }
  0xda   : > { %v430_v44 = vpop.permute.xlu1 %429  ;;  %v1139_v47 = vld [vmem:[#allocation2 + $0x18] sm:$0xff] }
  0xdb   : > { %v428_v45 = vpop.permute.xlu0 %427  ;;  %v1138_v46 = vld [vmem:[#allocation2 + $0x10] sm:$0xff]  ;;  %461 = vst.msk [vmem:[#allocation2 + $0x28] sm:$0xf] %vm455_vm1, %v430_v44 }
  0xdc   : > { %460 = vst.msk [vmem:[#allocation2 + $0x20] sm:$0xf] %vm455_vm1, %v428_v45  ;;  %v1957_v49 = vcombine.low %v1138_v46, %v1139_v47  ;;  %1498 = vperm.xlu1 %2221, %v1444_v43   ;;  %v2243_v43 = vld [vmem:[#allocation2 + $0x54] ss:$8 sps:$4 sm:$0xff]  }
  0xdd   : > { %1503 = vperm.xlu0 %2220, %v1445_v3  }
  0xde   : > { %1334 = vmatmul.mubr.bf16.gmra.mxu0 %v1957_v49  ;;  %v830_v50 = vpop.permute.xlu1 %829 }
  0xdf   : > { %v828_v51 = vpop.permute.xlu0 %827  ;;  %859 = vst.msk [vmem:[#allocation2 + $0x38] sm:$0xf] %vm851_vm5, %v830_v50  ;;  %1978 = vmatprep.mubr.msk.bf16.mxu0 %vm1274_vm8, %v2239_v19 }
  0xe0   : > { %858 = vst.msk [vmem:[#allocation2 + $0x30] sm:$0xf] %vm851_vm5, %v828_v51 }
  0xe2   : > { %v529_v52 = vpop.permute.xlu1 %528 }
  0xe3   : > { %v527_v53 = vpop.permute.xlu0 %526  ;;  %560 = vst.msk [vmem:[#allocation2 + $0x28] sm:$0xf] %vm554_vm2, %v529_v52 }
  0xe4   : > { %559 = vst.msk [vmem:[#allocation2 + $0x20] sm:$0xf] %vm554_vm2, %v527_v53 }
  0xe6   : > { %v929_v54 = vpop.permute.xlu1 %928 }
  0xe7   : > { %v927_v55 = vpop.permute.xlu0 %926  ;;  %958 = vst.msk [vmem:[#allocation2 + $0x38] sm:$0xf] %vm950_vm6, %v929_v54 }
  0xe8   : > { %957 = vst.msk [vmem:[#allocation2 + $0x30] sm:$0xf] %vm950_vm6, %v927_v55 }
  0xea   : > { %v628_v56 = vpop.permute.xlu1 %627 }
  0xeb   : > { %v626_v57 = vpop.permute.xlu0 %625  ;;  %659 = vst.msk [vmem:[#allocation2 + $0x28] sm:$0xf] %vm653_vm3, %v628_v56 }
  0xec   : > { %658 = vst.msk [vmem:[#allocation2 + $0x20] sm:$0xf] %vm653_vm3, %v626_v57 }
  0xee   : > { %v1028_v58 = vpop.permute.xlu1 %1027 }
  0xef   : > { %v1026_v59 = vpop.permute.xlu0 %1025  ;;  %1057 = vst.msk [vmem:[#allocation2 + $0x38] sm:$0xf] %vm1049_vm7, %v1028_v58 }
  0xf0   : > { %1056 = vst.msk [vmem:[#allocation2 + $0x30] sm:$0xf] %vm1049_vm7, %v1026_v59 }
  0xf2   : > { %v727_v60 = vpop.permute.xlu1 %726 }
  0xf3   : > { %v725_v61 = vpop.permute.xlu0 %724  ;;  %758 = vst.msk [vmem:[#allocation2 + $0x28] sm:$0xf] %vm752_vm4, %v727_v60 }
  0xf4   : > { %757 = vst.msk [vmem:[#allocation2 + $0x20] sm:$0xf] %vm752_vm4, %v725_v61 }
  0xf6   : > { %v438_v62 = vpop.permute.xlu1 %437 }
  0xf7   : > { %v436_v63 = vpop.permute.xlu0 %435  ;;  %v2236_v0 = vld [vmem:[#allocation2 + $0x30] ss:$8 sps:$4 sm:$0xff]   ;;  %465 = vst.msk [vmem:[#allocation2 + $0x48] sm:$0xf] %vm455_vm1, %v438_v62 }
  0xf8   : > { %464 = vst.msk [vmem:[#allocation2 + $0x40] sm:$0xf] %vm455_vm1, %v436_v63  ;;  %1350 = vmatmul.mubr.bf16.vlgmr.msra.gmra.mxu1 %v2236_v0 }
  0xf9   : > { %1980 = vmatprep.mubr.msk.bf16.mxu1 %vm1274_vm8, %v2241_v31 }
  0xfa   : > { %v826_v4 = vpop.permute.xlu1 %825 }
  0xfb   : > { %v824_v5 = vpop.permute.xlu0 %823  ;;  %857 = vst.msk [vmem:[#allocation2 + $0x28] sm:$0xf] %vm851_vm5, %v826_v4 }
  0xfc   : > { %856 = vst.msk [vmem:[#allocation2 + $0x20] sm:$0xf] %vm851_vm5, %v824_v5 }
  0xfe   : > { %v537_v6 = vpop.permute.xlu1 %536 }
  0xff   : > { %v535_v7 = vpop.permute.xlu0 %534  ;;  %564 = vst.msk [vmem:[#allocation2 + $0x48] sm:$0xf] %vm554_vm2, %v537_v6 }
 0x100   : > { %563 = vst.msk [vmem:[#allocation2 + $0x40] sm:$0xf] %vm554_vm2, %v535_v7 }
 0x102   : > { %v925_v8 = vpop.permute.xlu1 %924 }
 0x103   : > { %v923_v9 = vpop.permute.xlu0 %922  ;;  %956 = vst.msk [vmem:[#allocation2 + $0x28] sm:$0xf] %vm950_vm6, %v925_v8 }
 0x104   : > { %955 = vst.msk [vmem:[#allocation2 + $0x20] sm:$0xf] %vm950_vm6, %v923_v9 }
 0x106   : > { %v636_v2 = vpop.permute.xlu1 %635 }
 0x107   : > { %v634_v10 = vpop.permute.xlu0 %633  ;;  %663 = vst.msk [vmem:[#allocation2 + $0x48] sm:$0xf] %vm653_vm3, %v636_v2 }
 0x108   : > { %662 = vst.msk [vmem:[#allocation2 + $0x40] sm:$0xf] %vm653_vm3, %v634_v10 }
 0x10a   : > { %v1024_v11 = vpop.permute.xlu1 %1023 }
 0x10b   : > { %v1022_v12 = vpop.permute.xlu0 %1021  ;;  %1055 = vst.msk [vmem:[#allocation2 + $0x28] sm:$0xf] %vm1049_vm7, %v1024_v11 }
 0x10c   : > { %1054 = vst.msk [vmem:[#allocation2 + $0x20] sm:$0xf] %vm1049_vm7, %v1022_v12 }
 0x10e   : > { %v735_v13 = vpop.permute.xlu1 %734 }
 0x10f   : > { %v733_v14 = vpop.permute.xlu0 %732  ;;  %762 = vst.msk [vmem:[#allocation2 + $0x48] sm:$0xf] %vm752_vm4, %v735_v13 }
 0x110   : > { %761 = vst.msk [vmem:[#allocation2 + $0x40] sm:$0xf] %vm752_vm4, %v733_v14 }
 0x112   : > { %v834_v15 = vpop.permute.xlu1 %833  ;;  %v1141_v18 = vld [vmem:[#allocation2 + $0x28] sm:$0xff] }
 0x113   : > { %v832_v16 = vpop.permute.xlu0 %831  ;;  %v1140_v17 = vld [vmem:[#allocation2 + $0x20] sm:$0xff]  ;;  %861 = vst.msk [vmem:[#allocation2 + $0x48] sm:$0xf] %vm851_vm5, %v834_v15 }
 0x114   : > { %860 = vst.msk [vmem:[#allocation2 + $0x40] sm:$0xf] %vm851_vm5, %v832_v16  ;;  %v1959_v20 = vcombine.low %v1140_v17, %v1141_v18 }
 0x116   : > { %1342 = vmatmul.mubr.bf16.gmra.mxu0 %v1959_v20  ;;  %v933_v21 = vpop.permute.xlu1 %932 }
 0x117   : > { %v931_v22 = vpop.permute.xlu0 %930  ;;  %960 = vst.msk [vmem:[#allocation2 + $0x48] sm:$0xf] %vm950_vm6, %v933_v21 }
 0x118   : > { %959 = vst.msk [vmem:[#allocation2 + $0x40] sm:$0xf] %vm950_vm6, %v931_v22 }
 0x11a   : > { %v1032_v23 = vpop.permute.xlu1 %1031 }
 0x11b   : > { %v1030_v24 = vpop.permute.xlu0 %1029  ;;  %1059 = vst.msk [vmem:[#allocation2 + $0x48] sm:$0xf] %vm1049_vm7, %v1032_v23 }
 0x11c   : > { %1058 = vst.msk [vmem:[#allocation2 + $0x40] sm:$0xf] %vm1049_vm7, %v1030_v24 }
 0x11e   : > { %v442_v25 = vpop.permute.xlu1 %441 }
 0x11f   : > { %v440_v26 = vpop.permute.xlu0 %439  ;;  %467 = vst.msk [vmem:[#allocation2 + $0x58] sm:$0xf] %vm455_vm1, %v442_v25 }
 0x120   : > { %466 = vst.msk [vmem:[#allocation2 + $0x50] sm:$0xf] %vm455_vm1, %v440_v26 }
 0x122   : > { %v541_v27 = vpop.permute.xlu1 %540  ;;  %v1145_v30 = vld [vmem:[#allocation2 + $0x48] sm:$0xff] }
 0x123   : > { %v539_v28 = vpop.permute.xlu0 %538  ;;  %v1144_v29 = vld [vmem:[#allocation2 + $0x40] sm:$0xff]  ;;  %566 = vst.msk [vmem:[#allocation2 + $0x58] sm:$0xf] %vm554_vm2, %v541_v27 }
 0x124   : > { %565 = vst.msk [vmem:[#allocation2 + $0x50] sm:$0xf] %vm554_vm2, %v539_v28  ;;  %v1963_v32 = vcombine.low %v1144_v29, %v1145_v30 }
 0x126   : > { %1358 = vmatmul.mubr.bf16.gmra.mxu1 %v1963_v32  ;;  %v640_v33 = vpop.permute.xlu1 %639 }
 0x127   : > { %v638_v34 = vpop.permute.xlu0 %637  ;;  %665 = vst.msk [vmem:[#allocation2 + $0x58] sm:$0xf] %vm653_vm3, %v640_v33  ;;  %1981 = vmatprep.mubr.msk.bf16.mxu1 %vm1274_vm8, %v2243_v43 }
 0x128   : > { %664 = vst.msk [vmem:[#allocation2 + $0x50] sm:$0xf] %vm653_vm3, %v638_v34 }
 0x12a   : > { %v739_v35 = vpop.permute.xlu1 %738 }
 0x12b   : > { %v737_v36 = vpop.permute.xlu0 %736  ;;  %764 = vst.msk [vmem:[#allocation2 + $0x58] sm:$0xf] %vm752_vm4, %v739_v35 }
 0x12c   : > { %763 = vst.msk [vmem:[#allocation2 + $0x50] sm:$0xf] %vm752_vm4, %v737_v36 }
 0x12e   : > { %v838_v37 = vpop.permute.xlu1 %837 }
 0x12f   : > { %v836_v38 = vpop.permute.xlu0 %835  ;;  %863 = vst.msk [vmem:[#allocation2 + $0x58] sm:$0xf] %vm851_vm5, %v838_v37 }
 0x130   : > { %862 = vst.msk [vmem:[#allocation2 + $0x50] sm:$0xf] %vm851_vm5, %v836_v38 }
 0x132   : > { %v937_v39 = vpop.permute.xlu1 %936 }
 0x133   : > { %v935_v40 = vpop.permute.xlu0 %934  ;;  %962 = vst.msk [vmem:[#allocation2 + $0x58] sm:$0xf] %vm950_vm6, %v937_v39 }
 0x134   : > { %961 = vst.msk [vmem:[#allocation2 + $0x50] sm:$0xf] %vm950_vm6, %v935_v40 }
 0x136   : > { %v1036_v41 = vpop.permute.xlu1 %1035 }
 0x137   : > { %v1034_v42 = vpop.permute.xlu0 %1033  ;;  %1061 = vst.msk [vmem:[#allocation2 + $0x58] sm:$0xf] %vm1049_vm7, %v1036_v41 }
 0x138   : > { %1060 = vst.msk [vmem:[#allocation2 + $0x50] sm:$0xf] %vm1049_vm7, %v1034_v42 }
 0x13f   : > { %v2245_v44 = vld [vmem:[#allocation2 + $0x50] ss:$8 sps:$4 sm:$0xff]  }
 0x140   : > { %1366 = vmatmul.mubr.bf16.gmra.mxu1 %v2245_v44 }
 0x143   : > { %v1454_v48 = vpop.permute.xlu1 %1453 }
 0x144   : > { %v1449_v45 = vpop.permute.xlu0 %1448 }
 0x147   : > { %v1459_v58 = vpop.permute.xlu1 %1458 }
 0x148   : > { %v1464_v62 = vpop.permute.xlu0 %1463 }
 0x14b   : > { %v1469_v14 = vpop.permute.xlu1 %1468 }
 0x14c   : > { %v1474_v20 = vpop.permute.xlu0 %1473 }
 0x14f   : > { %v1479_v17 = vpop.permute.xlu1 %1478 }
 0x150   : > { %v1484_v39 = vpop.permute.xlu0 %1483 }
 0x153   : > { %v1489_v40 = vpop.permute.xlu1 %1488 }
 0x154   : > { %v1494_v41 = vpop.permute.xlu0 %1493 }
 0x174   : > { %v1327_v46 = vpop.f32.mrf.mxu0 }
 0x175   : > { %v1506_v49 = vmul.f32 %v1449_v45, %v1327_v46 }
 0x176   : > { %v1329_v47 = vpop.f32.mrf.mxu0 }
 0x177   : > { %v1539_v54 = vmul.f32 %v1506_v49, %v1506_v49 }
 0x178   : > { %v1330_v50 = vpop.f32.mrf.mxu0 }
 0x179   : > { %v2119_v51 = vpack.c.bf16 %v1330_v50, %v1327_v46  ;;  %v1507_v52 = vmul.f32 %v1454_v48, %v1330_v50  ;;  %v1499_v48 = vpop.permute.xlu1 %1498 }
 0x17a   : > { %v1332_v53 = vpop.f32.mrf.mxu0 }
 0x17b   : > { %2120 = vst [vmem:[%s2379_s4] sm:$0xff] %v2119_v51   ;;  %v1519_v55 = vadd.f32 %v1507_v52, %v1506_v49  ;;  %v1540_v56 = vmul.f32 %v1507_v52, %v1507_v52 }
 0x17d   : > { %v1551_v57 = vadd.f32 %v1540_v56, %v1539_v54 }
 0x19e   : > { %v1335_v59 = vpop.f32.mrf.mxu0 }
 0x19f   : > { %v1508_v60 = vmul.f32 %v1459_v58, %v1335_v59  ;;  %v1504_v58 = vpop.permute.xlu0 %1503 }
 0x1a0   : > { %v1337_v61 = vpop.f32.mrf.mxu0 }
 0x1a1   : > { %v1520_v63 = vadd.f32 %v1519_v55, %v1508_v60  ;;  %v1541_v0 = vmul.f32 %v1508_v60, %v1508_v60 }
 0x1a2   : > { %v1338_v1 = vpop.f32.mrf.mxu0 }
 0x1a3   : > { %v1552_v3 = vadd.f32 %v1551_v57, %v1541_v0  ;;  %v2124_v4 = vpack.c.bf16 %v1338_v1, %v1335_v59  ;;  %v1509_v5 = vmul.f32 %v1464_v62, %v1338_v1 }
 0x1a4   : > { %v1340_v6 = vpop.f32.mrf.mxu0 }
 0x1a5   : > { %2146 = vst [vmem:[%s2379_s4 + $0x8] sm:$0xff] %v2124_v4   ;;  %v1521_v7 = vadd.f32 %v1520_v63, %v1509_v5  ;;  %v1542_v8 = vmul.f32 %v1509_v5, %v1509_v5 }
 0x1a7   : > { %v1553_v9 = vadd.f32 %v1552_v3, %v1542_v8 }
 0x1b8   : > { %v1351_v2 = vpop.f32.mrf.mxu1 }
 0x1b9   : > { %v1512_v22 = vmul.f32 %v1479_v17, %v1351_v2  ;;  %v1538_v17 = vld [vmem:[%s2369_s12] sm:$0x1] }
 0x1ba   : > { %v1353_v10 = vpop.f32.mrf.mxu1 }
 0x1bb   : > { %v1545_v30 = vmul.f32 %v1512_v22, %v1512_v22 }
 0x1bc   : > { %v1354_v11 = vpop.f32.mrf.mxu1 }
 0x1bd   : > { %v2134_v12 = vpack.c.bf16 %v1354_v11, %v1351_v2  ;;  %v1513_v42 = vmul.f32 %v1484_v39, %v1354_v11 }
 0x1be   : > { %v1356_v13 = vpop.f32.mrf.mxu1 }
 0x1bf   : > { %2148 = vst [vmem:[%s2379_s4 + $0x18] sm:$0xff] %v2134_v12   ;;  %v1546_v45 = vmul.f32 %v1513_v42, %v1513_v42 }
 0x1d6   : > { %v1343_v15 = vpop.f32.mrf.mxu0 }
 0x1d7   : > { %v1510_v16 = vmul.f32 %v1469_v14, %v1343_v15  ;;  %v1518_v14 = vld [vmem:[%s2361_s29] sm:$0x1] }
 0x1d8   : > { %v1345_v18 = vpop.f32.mrf.mxu0 }
 0x1d9   : > { %v1543_v19 = vmul.f32 %v1510_v16, %v1510_v16  ;;  %v1522_v23 = vadd.f32 %v1521_v7, %v1510_v16 }
 0x1da   : > { %v1346_v21 = vpop.f32.mrf.mxu0 }
 0x1db   : > { %v2129_v24 = vpack.c.bf16 %v1346_v21, %v1343_v15  ;;  %v1511_v25 = vmul.f32 %v1474_v20, %v1346_v21  ;;  %v1554_v27 = vadd.f32 %v1553_v9, %v1543_v19 }
 0x1dc   : > { %v1348_v26 = vpop.f32.mrf.mxu0 }
 0x1dd   : > { %2147 = vst [vmem:[%s2379_s4 + $0x10] sm:$0xff] %v2129_v24   ;;  %v1523_v28 = vadd.f32 %v1522_v23, %v1511_v25  ;;  %v1544_v29 = vmul.f32 %v1511_v25, %v1511_v25 }
 0x1df   : > { %v1524_v31 = vadd.f32 %v1523_v28, %v1512_v22  ;;  %v1555_v32 = vadd.f32 %v1554_v27, %v1544_v29 }
 0x1e1   : > { %v1556_v33 = vadd.f32 %v1555_v32, %v1545_v30  ;;  %v1525_v46 = vadd.f32 %v1524_v31, %v1513_v42 }
 0x1e3   : > { %v1557_v51 = vadd.f32 %v1556_v33, %v1546_v45 }
 0x1e6   : > { %v1359_v34 = vpop.f32.mrf.mxu1 }
 0x1e7   : > { %v1514_v43 = vmul.f32 %v1489_v40, %v1359_v34 }
 0x1e8   : > { %v1361_v35 = vpop.f32.mrf.mxu1 }
 0x1e9   : > { %v1547_v47 = vmul.f32 %v1514_v43, %v1514_v43  ;;  %v1526_v50 = vadd.f32 %v1525_v46, %v1514_v43 }
 0x1ea   : > { %v1362_v36 = vpop.f32.mrf.mxu1 }
 0x1eb   : > { %v2139_v37 = vpack.c.bf16 %v1362_v36, %v1359_v34  ;;  %v1515_v44 = vmul.f32 %v1494_v41, %v1362_v36  ;;  %v1558_v55 = vadd.f32 %v1557_v51, %v1547_v47 }
 0x1ec   : > { %v1364_v38 = vpop.f32.mrf.mxu1 }
 0x1ed   : > { %2149 = vst [vmem:[%s2379_s4 + $0x20] sm:$0xff] %v2139_v37   ;;  %v1548_v52 = vmul.f32 %v1515_v44, %v1515_v44  ;;  %v1527_v56 = vadd.f32 %v1526_v50, %v1515_v44 }
 0x1ef   : > { %v1559_v60 = vadd.f32 %v1558_v55, %v1548_v52 }
 0x200   : > { %v1367_v49 = vpop.f32.mrf.mxu1 }
 0x201   : > { %v1516_v53 = vmul.f32 %v1499_v48, %v1367_v49 }
 0x202   : > { %v1369_v54 = vpop.f32.mrf.mxu1 }
 0x203   : > { %v1549_v57 = vmul.f32 %v1516_v53, %v1516_v53  ;;  %v1528_v61 = vadd.f32 %v1527_v56, %v1516_v53 }
 0x204   : > { %v1370_v59 = vpop.f32.mrf.mxu1 }
 0x205   : > { %v2144_v62 = vpack.c.bf16 %v1370_v59, %v1367_v49  ;;  %v1517_v63 = vmul.f32 %v1504_v58, %v1370_v59  ;;  %v1560_v1 = vadd.f32 %v1559_v60, %v1549_v57 }
 0x206   : > { %v1372_v0 = vpop.f32.mrf.mxu1 }
 0x207   : > { %2150 = vst [vmem:[%s2379_s4 + $0x28] sm:$0xff] %v2144_v62   ;;  %v1529_v3 = vadd.f32 %v1528_v61, %v1517_v63  ;;  %v1550_v4 = vmul.f32 %v1517_v63, %v1517_v63 }
 0x209   : > { %v1530_v5 = vrot.slane %v1529_v3, 4  ;;  %v1561_v6 = vadd.f32 %v1560_v1, %v1550_v4 }
 0x20b   : > { %v1531_v7 = vadd.f32 %v1530_v5, %v1529_v3  ;;  %v1562_v8 = vrot.slane %v1561_v6, 4 }
 0x20d   : > { %v1532_v9 = vrot.slane %v1531_v7, 2  ;;  %v1563_v2 = vadd.f32 %v1562_v8, %v1561_v6 }
 0x20f   : > { %v1533_v10 = vadd.f32 %v1532_v9, %v1531_v7  ;;  %v1564_v11 = vrot.slane %v1563_v2, 2 }
 0x211   : > { %v1534_v12 = vrot.slane %v1533_v10, 1  ;;  %v1565_v13 = vadd.f32 %v1564_v11, %v1563_v2 }
 0x213   : > { %v1535_v15 = vadd.f32 %v1534_v12, %v1533_v10  ;;  %v1566_v16 = vrot.slane %v1565_v13, 1 }
 0x215   : > { %v1536_v18 = vadd.f32 %v1535_v15, %v1518_v14  ;;  %v1567_v19 = vadd.f32 %v1566_v16, %v1565_v13 }
 0x217   : > { %1537 = vst [vmem:[%s2361_s29] sm:$0x1] %v1536_v18  ;;  %v1568_v20 = vadd.f32 %v1567_v19, %v1538_v17 }
 0x219   : > { %1569 = vst [vmem:[%s2369_s12] sm:$0x1] %v1568_v20 }
 0x21a PF: > { %s16_s22 = sadd.s32 1, %s2284_s22   ;;  %s2837_s18 = smov %s2276_s20 }
 0x21b   : > { %p13_p8 = scmp.ge.s32.totalorder %s16_s22, 8   ;;  %s2838_s19 = smov %s2280_s21 }
 0x21c   : > { %s2839_s20 = smov %s2842_s23  ;;  %s2840_s21 = smov %s2846_s24 }
 0x21d   :  { %15 = sbr.rel (!%p13_p8) target bundleno = 3 (0x3), region = 102 }

</bundles_post_ra>
